<compile_context>
chip_gen: v6e
topology: v6e:2x2x1
jax: 0.10.0
libtpu: 0.0.40
codegen_flags: <defaults>
</compile_context>

<pallas_src>
import functools

import jax
import jax.numpy as jnp
from jax.experimental import pallas as pl
from jax.experimental.pallas import tpu as pltpu


KPAD = 32        # stem contraction dim: 3*3*3 = 27, zero-padded to 32
CPAD = 128       # stem output channels: 32, zero-padded to 128 (lane-dense)
FEAT = 1280      # EfficientNet-b0 feature width
HID = 512        # detection head hidden width
NCLS_PAD = 128   # num_classes (5) padded to a full lane width
NSPLIT = 2       # parallel split of the spatial reduction (v7x: one per TC)


def _round_up(x, m):
    return (x + m - 1) // m * m


def _cdiv(a, b):
    return -(-a // b)


# ----------------------------------------------------------------------------
# Kernel 1 (fused): stem conv (im2col matmul) + bias + swish + avg-pool sums.
#   grid = (B, NSPLIT, n_tiles); the [1, 1, 8, CPAD] output block stays
#   resident across the tile axis and accumulates per-sublane partial sums.
#   No masking / no cross-sublane reduce / no normalization in the hot loop.
# ----------------------------------------------------------------------------
def stem_pool_kernel(p_ref, w_ref, b_ref, o_ref, *, tile_rows):
    t = pl.program_id(2)

    @pl.when(t == 0)
    def _():
        o_ref[...] = jnp.zeros_like(o_ref)

    x = p_ref[0]                                                  # [TR, KPAD] bf16
    y = jnp.dot(x, w_ref[...], preferred_element_type=jnp.float32)
    y = y + b_ref[...]                                            # fp32 bias
    y = y * jax.nn.sigmoid(y)                                     # swish (fp32)

    # Per-sublane partial sums: pure VPU vreg adds, no XLU in the hot loop.
    part = y.reshape(tile_rows // 8, 8, CPAD).sum(axis=0)         # [8, CPAD]
    o_ref[...] += part[None, None]


def stem_pool(patches_bf16, w_stem, b_stem, *, tile_rows, n_tiles):
    bsz = patches_bf16.shape[0]
    kern = functools.partial(stem_pool_kernel, tile_rows=tile_rows)
    return pl.pallas_call(
        kern,
        out_shape=jax.ShapeDtypeStruct((bsz, NSPLIT, 8, CPAD), jnp.float32),
        grid=(bsz, NSPLIT, n_tiles),
        in_specs=[
            pl.BlockSpec((1, tile_rows, KPAD),
                         lambda b, c, t: (b, c * n_tiles + t, 0)),
            pl.BlockSpec((KPAD, CPAD), lambda b, c, t: (0, 0)),
            pl.BlockSpec((1, CPAD), lambda b, c, t: (0, 0)),
        ],
        out_specs=pl.BlockSpec((1, 1, 8, CPAD), lambda b, c, t: (b, c, 0, 0)),
        compiler_params=pltpu.CompilerParams(
            dimension_semantics=("parallel", "parallel", "arbitrary")),
    )(patches_bf16, w_stem, b_stem)


# ----------------------------------------------------------------------------
# Kernel 2: pool finalization + projection to 1280 features (swish) + head.
#   Combine the NSPLIT*8 partial sums, subtract the zero-pad-row contribution
#   (each padded row added exactly swish(b_stem)), scale by 1/S, then
#   Linear(1280,512) -> ReLU -> Dropout(eval)=identity -> Linear(512,ncls)
#   -> Sigmoid.  Tiny latency-bound kernel: one grid step, full blocks.
# ----------------------------------------------------------------------------
def head_kernel(sums_ref, bstem_ref, wp_ref, bp_ref, w1_ref, b1_ref,
                w2_ref, b2_ref, o_ref, *, s_valid, pad_rows):
    pooled = jnp.sum(sums_ref[...], axis=1)                       # [Bp, CPAD]
    bsw = bstem_ref[...]
    bsw = bsw * jax.nn.sigmoid(bsw)                               # swish(b_stem)
    pooled = pooled - float(pad_rows) * bsw                       # remove pad rows
    pooled = pooled * (1.0 / float(s_valid))                      # mean

    feat = jnp.dot(pooled.astype(jnp.bfloat16), wp_ref[...],
                   preferred_element_type=jnp.float32) + bp_ref[...]
    feat = feat * jax.nn.sigmoid(feat)                            # swish [Bp,1280]
    h = jnp.dot(feat.astype(jnp.bfloat16), w1_ref[...],
                preferred_element_type=jnp.float32) + b1_ref[...]
    h = jnp.maximum(h, 0.0)                                       # ReLU
    # Dropout(0.3): identity at inference.
    # TODO(synk): no train-mode dropout path.
    logits = jnp.dot(h.astype(jnp.bfloat16), w2_ref[...],
                     preferred_element_type=jnp.float32) + b2_ref[...]
    o_ref[...] = jax.nn.sigmoid(logits)                           # [Bp, NCLS_PAD]


def head(pooled_sums, b_stem, wp, bp, w1, b1, w2, b2, *, s_valid, pad_rows):
    bp_rows, nsub, _ = pooled_sums.shape
    full = lambda shape: pl.BlockSpec(shape, lambda i, _s=shape: (0,) * len(_s))
    kern = functools.partial(head_kernel, s_valid=s_valid, pad_rows=pad_rows)
    return pl.pallas_call(
        kern,
        out_shape=jax.ShapeDtypeStruct((bp_rows, NCLS_PAD), jnp.float32),
        grid=(1,),
        in_specs=[
            full((bp_rows, nsub, CPAD)),
            full((1, CPAD)),
            full((CPAD, FEAT)), full((1, FEAT)),
            full((FEAT, HID)), full((1, HID)),
            full((HID, NCLS_PAD)), full((1, NCLS_PAD)),
        ],
        out_specs=full((bp_rows, NCLS_PAD)),
        compiler_params=pltpu.CompilerParams(
            dimension_semantics=("arbitrary",)),
    )(pooled_sums, b_stem, wp, bp, w1, b1, w2, b2)


# ----------------------------------------------------------------------------
# im2col glue (plain JAX): 3x3 conv, stride 2, pad 1, emitted directly as
# bf16 [B, S_pad, KPAD] from an NHWC view (no fp32 patch materialization).
# Same output arithmetic as torch Conv2d(k=3, s=2, p=1).
# TODO(synk): tap-major channel flattening (tap*C + c) is only self-consistent
# with the synthetic weights; real torch stem weights would need reordering.
# ----------------------------------------------------------------------------
def build_patches_bf16(x_nchw, s_pad):
    bsz, c, hgt, wid = x_nchw.shape
    ho = (hgt - 1) // 2 + 1
    wo = (wid - 1) // 2 + 1
    x = jnp.transpose(x_nchw, (0, 2, 3, 1)).astype(jnp.bfloat16)  # NHWC bf16
    xp = jnp.pad(x, ((0, 0), (1, 1), (1, 1), (0, 0)))
    taps = [xp[:, ki:ki + 2 * (ho - 1) + 1:2, kj:kj + 2 * (wo - 1) + 1:2, :]
            for ki in range(3) for kj in range(3)]                # 9 x [B,Ho,Wo,C]
    p = jnp.concatenate(taps, axis=-1).reshape(bsz, ho * wo, 9 * c)
    out = jnp.zeros((bsz, s_pad, KPAD), jnp.bfloat16)
    return out.at[:, :ho * wo, :9 * c].set(p)


# ----------------------------------------------------------------------------
# Params
# ----------------------------------------------------------------------------
def init_params(key, num_classes=5):
    ks = jax.random.split(key, 8)
    scale = 0.05
    return {
        # synthetic stem: Conv2d(3, 32, k=3, s=2, p=1)
        "w_stem": scale * jax.random.normal(ks[0], (27, 32), jnp.float32),
        "b_stem": scale * jax.random.normal(ks[1], (1, 32), jnp.float32),
        # synthetic projection to the 1280-d EfficientNet feature size
        "w_proj": scale * jax.random.normal(ks[2], (32, FEAT), jnp.float32),
        "b_proj": scale * jax.random.normal(ks[3], (1, FEAT), jnp.float32),
        # detection head: Linear(1280, 512), Linear(512, num_classes)
        "w1": scale * jax.random.normal(ks[4], (FEAT, HID), jnp.float32),
        "b1": scale * jax.random.normal(ks[5], (1, HID), jnp.float32),
        "w2": scale * jax.random.normal(ks[6], (HID, num_classes), jnp.float32),
        "b2": scale * jax.random.normal(ks[7], (1, num_classes), jnp.float32),
    }


def prepare_params(params, num_classes=5):
    """Zero-pad to lane-dense shapes and cast matmul weights to bf16."""
    w_stem = jnp.zeros((KPAD, CPAD), jnp.float32).at[:27, :32].set(
        params["w_stem"])
    b_stem = jnp.zeros((1, CPAD), jnp.float32).at[:, :32].set(params["b_stem"])
    w_proj = jnp.zeros((CPAD, FEAT), jnp.float32).at[:32, :].set(
        params["w_proj"])
    w2 = jnp.zeros((HID, NCLS_PAD), jnp.float32).at[:, :num_classes].set(
        params["w2"])
    b2 = jnp.zeros((1, NCLS_PAD), jnp.float32).at[:, :num_classes].set(
        params["b2"])
    return {
        "w_stem": w_stem.astype(jnp.bfloat16),
        "b_stem": b_stem,                       # biases stay fp32
        "w_proj": w_proj.astype(jnp.bfloat16),
        "b_proj": params["b_proj"],
        "w1": params["w1"].astype(jnp.bfloat16),
        "b1": params["b1"],
        "w2": w2.astype(jnp.bfloat16),
        "b2": b2,
    }


# ----------------------------------------------------------------------------
# DetectionModel forward
# ----------------------------------------------------------------------------
def detection_model_forward(x_nchw, prepped, num_classes=5):
    bsz, _, hgt, wid = x_nchw.shape
    ho = (hgt - 1) // 2 + 1
    wo = (wid - 1) // 2 + 1
    s = ho * wo

    # Large row tiles (~2048) for real images; tile count chosen so the
    # rounded-up spatial extent (multiple of 16 rows, bf16 tile) is minimal.
    target = 2048
    n_tiles = max(1, _cdiv(s, NSPLIT * target))
    tile_rows = _round_up(_cdiv(s, NSPLIT * n_tiles), 16)
    s_pad = NSPLIT * n_tiles * tile_rows
    pad_rows = s_pad - s

    patches = build_patches_bf16(x_nchw, s_pad)         # [B, S_pad, KPAD] bf16

    sums = stem_pool(patches, prepped["w_stem"], prepped["b_stem"],
                     tile_rows=tile_rows, n_tiles=n_tiles)   # [B,NSPLIT,8,CPAD]

    bp_rows = _round_up(max(bsz, 16), 16)
    sums = sums.reshape(bsz, NSPLIT * 8, CPAD)
    sums = jnp.pad(sums, ((0, bp_rows - bsz), (0, 0), (0, 0)))

    out = head(sums, prepped["b_stem"],
               prepped["w_proj"], prepped["b_proj"],
               prepped["w1"], prepped["b1"],
               prepped["w2"], prepped["b2"],
               s_valid=s, pad_rows=pad_rows)             # [Bp, NCLS_PAD]
    return out[:bsz, :num_classes]


if __name__ == "__main__":
    key = jax.random.PRNGKey(0)
    k_x, k_p = jax.random.split(key)
    # small shapes: batch=2, channels=3 (RGB), spatial=16
    x = jax.random.normal(k_x, (2, 3, 16, 16), jnp.float32)
    params = init_params(k_p, num_classes=5)
    prepped = prepare_params(params, num_classes=5)

    fwd = jax.jit(functools.partial(detection_model_forward, num_classes=5))
    out = jax.block_until_ready(fwd(x, prepped))
    assert out.shape == (2, 5)
    assert bool(jnp.all((out > 0.0) & (out < 1.0)))      # sigmoid range
    print("KERNEL_OK")
</pallas_src>

<mosaic_0001>
module attributes {stable_mosaic.version = 11 : i64} {
  func.func @stem_pool_kernel(%arg0: i32, %arg1: i32, %arg2: i32, %arg3: memref<1x32x32xbf16, #tpu.memory_space<vmem>>, %arg4: memref<32x128xbf16, #tpu.memory_space<vmem>>, %arg5: memref<1x128xf32, #tpu.memory_space<vmem>>, %arg6: memref<1x1x8x128xf32, #tpu.memory_space<vmem>>) attributes {dimension_semantics = [#tpu.dimension_semantics<parallel>, #tpu.dimension_semantics<parallel>, #tpu.dimension_semantics<arbitrary>], iteration_bounds = array<i64: 2, 2, 1>, scalar_prefetch = 0 : i64, scratch_operands = 0 : i64, tpu.core_type = #tpu.core_type<tc>, window_params = [{transform_indices = @transform_0, window_bounds = array<i64: 1, 32, 32>}, {pipeline_mode = #tpu.pipeline_mode<synchronous>, transform_indices = @transform_1, window_bounds = array<i64: 32, 128>}, {pipeline_mode = #tpu.pipeline_mode<synchronous>, transform_indices = @transform_2, window_bounds = array<i64: 1, 128>}, {transform_indices = @transform_3, window_bounds = array<i64: 1, 1, 8, 128>}]} {
    %c0_i32 = arith.constant 0 : i32
    %0 = arith.cmpi eq, %arg2, %c0_i32 : i32
    %1 = arith.extui %0 : i1 to i32
    %c0_i32_0 = arith.constant 0 : i32
    %2 = arith.cmpi ne, %1, %c0_i32_0 : i32
    scf.if %2 {
      %cst_17 = arith.constant 0.000000e+00 : f32
      %22 = vector.broadcast %cst_17 : f32 to vector<1x1x8x128xf32>
      %c0_18 = arith.constant 0 : index
      %c0_19 = arith.constant 0 : index
      %c0_20 = arith.constant 0 : index
      %c0_21 = arith.constant 0 : index
      %23 = vector.load %arg6[%c0_18, %c0_19, %c0_20, %c0_21] : memref<1x1x8x128xf32, #tpu.memory_space<vmem>>, vector<1x1x8x128xf32>
      tpu.vector_store %arg6[%c0_18, %c0_19, %c0_20, %c0_21], %22 {strides = array<i32>} : memref<1x1x8x128xf32, #tpu.memory_space<vmem>>, vector<1x1x8x128xf32>,
    } else {
    }
    %c0 = arith.constant 0 : index
    %c0_1 = arith.constant 0 : index
    %c0_2 = arith.constant 0 : index
    %3 = vector.load %arg3[%c0, %c0_1, %c0_2] : memref<1x32x32xbf16, #tpu.memory_space<vmem>>, vector<1x32x32xbf16>
    %4 = vector.shape_cast %3 : vector<1x32x32xbf16> to vector<32x32xbf16>
    %c0_3 = arith.constant 0 : index
    %c0_4 = arith.constant 0 : index
    %5 = vector.load %arg4[%c0_3, %c0_4] : memref<32x128xbf16, #tpu.memory_space<vmem>>, vector<32x128xbf16>
    %cst = arith.constant dense<0.000000e+00> : vector<32x128xf32>
    %6 = tpu.matmul %4, %5, %cst {dimension_numbers = #tpu.dot_dimension_numbers<[1], [0], [0], [1], [0, 0, 1, 1], [], []>} : vector<32x32xbf16>, vector<32x128xbf16>, vector<32x128xf32> -> vector<32x128xf32>
    %c0_5 = arith.constant 0 : index
    %c0_6 = arith.constant 0 : index
    %7 = vector.load %arg5[%c0_5, %c0_6] : memref<1x128xf32, #tpu.memory_space<vmem>>, vector<1x128xf32>
    %8 = vector.broadcast %7 : vector<1x128xf32> to vector<32x128xf32>
    %9 = arith.addf %6, %8 : vector<32x128xf32>
    %10 = arith.negf %9 : vector<32x128xf32>
    %11 = math.exp %10 : vector<32x128xf32>
    %cst_7 = arith.constant 1.000000e+00 : f32
    %12 = vector.broadcast %cst_7 : f32 to vector<32x128xf32>
    %13 = arith.addf %12, %11 : vector<32x128xf32>
    %14 = arith.divf %12, %13 : vector<32x128xf32>
    %15 = arith.mulf %9, %14 : vector<32x128xf32>
    %16 = vector.shape_cast %15 : vector<32x128xf32> to vector<4x8x128xf32>
    %cst_8 = arith.constant dense<0.000000e+00> : vector<8x128xf32>
    %17 = vector.multi_reduction <add>, %16, %cst_8 [0] : vector<4x8x128xf32> to vector<8x128xf32>
    %c0_9 = arith.constant 0 : index
    %c0_10 = arith.constant 0 : index
    %c0_11 = arith.constant 0 : index
    %c0_12 = arith.constant 0 : index
    %18 = vector.load %arg6[%c0_9, %c0_10, %c0_11, %c0_12] : memref<1x1x8x128xf32, #tpu.memory_space<vmem>>, vector<1x1x8x128xf32>
    %19 = vector.shape_cast %17 : vector<8x128xf32> to vector<1x1x8x128xf32>
    %20 = arith.addf %18, %19 : vector<1x1x8x128xf32>
    %c0_13 = arith.constant 0 : index
    %c0_14 = arith.constant 0 : index
    %c0_15 = arith.constant 0 : index
    %c0_16 = arith.constant 0 : index
    %21 = vector.load %arg6[%c0_13, %c0_14, %c0_15, %c0_16] : memref<1x1x8x128xf32, #tpu.memory_space<vmem>>, vector<1x1x8x128xf32>
    tpu.vector_store %arg6[%c0_13, %c0_14, %c0_15, %c0_16], %20 {strides = array<i32>} : memref<1x1x8x128xf32, #tpu.memory_space<vmem>>, vector<1x1x8x128xf32>,
    return
  }
  func.func @transform_0(%arg0: i32, %arg1: i32, %arg2: i32) -> (i32, i32, i32) {
    %c1_i32 = arith.constant 1 : i32
    %0 = arith.muli %arg1, %c1_i32 : i32
    %1 = arith.addi %0, %arg2 : i32
    %c0_i32 = arith.constant 0 : i32
    %c0_i32_0 = arith.constant 0 : i32
    return %arg0, %1, %c0_i32 : i32, i32, i32
  }
  func.func @transform_1(%arg0: i32, %arg1: i32, %arg2: i32) -> (i32, i32) {
    %c0_i32 = arith.constant 0 : i32
    %c0_i32_0 = arith.constant 0 : i32
    %c0_i32_1 = arith.constant 0 : i32
    return %c0_i32, %c0_i32_0 : i32, i32
  }
  func.func @transform_2(%arg0: i32, %arg1: i32, %arg2: i32) -> (i32, i32) {
    %c0_i32 = arith.constant 0 : i32
    %c0_i32_0 = arith.constant 0 : i32
    %c0_i32_1 = arith.constant 0 : i32
    return %c0_i32, %c0_i32_0 : i32, i32
  }
  func.func @transform_3(%arg0: i32, %arg1: i32, %arg2: i32) -> (i32, i32, i32, i32) {
    %c0_i32 = arith.constant 0 : i32
    %c0_i32_0 = arith.constant 0 : i32
    %c0_i32_1 = arith.constant 0 : i32
    return %arg0, %arg1, %c0_i32, %c0_i32_0 : i32, i32, i32, i32
  }
}

module attributes {stable_mosaic.version = 11 : i64} {
  func.func @head_kernel(%arg0: i32, %arg1: memref<16x16x128xf32, #tpu.memory_space<vmem>>, %arg2: memref<1x128xf32, #tpu.memory_space<vmem>>, %arg3: memref<128x1280xbf16, #tpu.memory_space<vmem>>, %arg4: memref<1x1280xf32, #tpu.memory_space<vmem>>, %arg5: memref<1280x512xbf16, #tpu.memory_space<vmem>>, %arg6: memref<1x512xf32, #tpu.memory_space<vmem>>, %arg7: memref<512x128xbf16, #tpu.memory_space<vmem>>, %arg8: memref<1x128xf32, #tpu.memory_space<vmem>>, %arg9: memref<16x128xf32, #tpu.memory_space<vmem>>) attributes {dimension_semantics = [#tpu.dimension_semantics<arbitrary>], iteration_bounds = array<i64: 1>, scalar_prefetch = 0 : i64, scratch_operands = 0 : i64, tpu.core_type = #tpu.core_type<tc>, window_params = [{pipeline_mode = #tpu.pipeline_mode<synchronous>, transform_indices = @transform_0, window_bounds = array<i64: 16, 16, 128>}, {pipeline_mode = #tpu.pipeline_mode<synchronous>, transform_indices = @transform_1, window_bounds = array<i64: 1, 128>}, {pipeline_mode = #tpu.pipeline_mode<synchronous>, transform_indices = @transform_2, window_bounds = array<i64: 128, 1280>}, {pipeline_mode = #tpu.pipeline_mode<synchronous>, transform_indices = @transform_3, window_bounds = array<i64: 1, 1280>}, {pipeline_mode = #tpu.pipeline_mode<synchronous>, transform_indices = @transform_4, window_bounds = array<i64: 1280, 512>}, {pipeline_mode = #tpu.pipeline_mode<synchronous>, transform_indices = @transform_5, window_bounds = array<i64: 1, 512>}, {pipeline_mode = #tpu.pipeline_mode<synchronous>, transform_indices = @transform_6, window_bounds = array<i64: 512, 128>}, {pipeline_mode = #tpu.pipeline_mode<synchronous>, transform_indices = @transform_7, window_bounds = array<i64: 1, 128>}, {pipeline_mode = #tpu.pipeline_mode<synchronous>, transform_indices = @transform_8, window_bounds = array<i64: 16, 128>}]} {
    %c0 = arith.constant 0 : index
    %c0_0 = arith.constant 0 : index
    %c0_1 = arith.constant 0 : index
    %0 = vector.load %arg1[%c0, %c0_0, %c0_1] : memref<16x16x128xf32, #tpu.memory_space<vmem>>, vector<16x16x128xf32>
    %cst = arith.constant dense<0.000000e+00> : vector<16x128xf32>
    %1 = vector.multi_reduction <add>, %0, %cst [1] : vector<16x16x128xf32> to vector<16x128xf32>
    %c0_2 = arith.constant 0 : index
    %c0_3 = arith.constant 0 : index
    %2 = vector.load %arg2[%c0_2, %c0_3] : memref<1x128xf32, #tpu.memory_space<vmem>>, vector<1x128xf32>
    %3 = arith.negf %2 : vector<1x128xf32>
    %4 = math.exp %3 : vector<1x128xf32>
    %cst_4 = arith.constant 1.000000e+00 : f32
    %5 = vector.broadcast %cst_4 : f32 to vector<1x128xf32>
    %6 = arith.addf %5, %4 : vector<1x128xf32>
    %7 = arith.divf %5, %6 : vector<1x128xf32>
    %8 = arith.mulf %2, %7 : vector<1x128xf32>
    %cst_5 = arith.constant 0.000000e+00 : f32
    %9 = vector.broadcast %cst_5 : f32 to vector<1x128xf32>
    %10 = arith.mulf %9, %8 : vector<1x128xf32>
    %11 = vector.broadcast %10 : vector<1x128xf32> to vector<16x128xf32>
    %12 = arith.subf %1, %11 : vector<16x128xf32>
    %cst_6 = arith.constant 1.562500e-02 : f32
    %13 = vector.broadcast %cst_6 : f32 to vector<16x128xf32>
    %14 = arith.mulf %12, %13 : vector<16x128xf32>
    %15 = arith.truncf %14 : vector<16x128xf32> to vector<16x128xbf16>
    %c0_7 = arith.constant 0 : index
    %c0_8 = arith.constant 0 : index
    %16 = vector.load %arg3[%c0_7, %c0_8] : memref<128x1280xbf16, #tpu.memory_space<vmem>>, vector<128x1280xbf16>
    %cst_9 = arith.constant dense<0.000000e+00> : vector<16x1280xf32>
    %17 = tpu.matmul %15, %16, %cst_9 {dimension_numbers = #tpu.dot_dimension_numbers<[1], [0], [0], [1], [0, 0, 1, 1], [], []>} : vector<16x128xbf16>, vector<128x1280xbf16>, vector<16x1280xf32> -> vector<16x1280xf32>
    %c0_10 = arith.constant 0 : index
    %c0_11 = arith.constant 0 : index
    %18 = vector.load %arg4[%c0_10, %c0_11] : memref<1x1280xf32, #tpu.memory_space<vmem>>, vector<1x1280xf32>
    %19 = vector.broadcast %18 : vector<1x1280xf32> to vector<16x1280xf32>
    %20 = arith.addf %17, %19 : vector<16x1280xf32>
    %21 = arith.negf %20 : vector<16x1280xf32>
    %22 = math.exp %21 : vector<16x1280xf32>
    %cst_12 = arith.constant 1.000000e+00 : f32
    %23 = vector.broadcast %cst_12 : f32 to vector<16x1280xf32>
    %24 = arith.addf %23, %22 : vector<16x1280xf32>
    %25 = arith.divf %23, %24 : vector<16x1280xf32>
    %26 = arith.mulf %20, %25 : vector<16x1280xf32>
    %27 = arith.truncf %26 : vector<16x1280xf32> to vector<16x1280xbf16>
    %c0_13 = arith.constant 0 : index
    %c0_14 = arith.constant 0 : index
    %28 = vector.load %arg5[%c0_13, %c0_14] : memref<1280x512xbf16, #tpu.memory_space<vmem>>, vector<1280x512xbf16>
    %cst_15 = arith.constant dense<0.000000e+00> : vector<16x512xf32>
    %29 = tpu.matmul %27, %28, %cst_15 {dimension_numbers = #tpu.dot_dimension_numbers<[1], [0], [0], [1], [0, 0, 1, 1], [], []>} : vector<16x1280xbf16>, vector<1280x512xbf16>, vector<16x512xf32> -> vector<16x512xf32>
    %c0_16 = arith.constant 0 : index
    %c0_17 = arith.constant 0 : index
    %30 = vector.load %arg6[%c0_16, %c0_17] : memref<1x512xf32, #tpu.memory_space<vmem>>, vector<1x512xf32>
    %31 = vector.broadcast %30 : vector<1x512xf32> to vector<16x512xf32>
    %32 = arith.addf %29, %31 : vector<16x512xf32>
    %cst_18 = arith.constant 0.000000e+00 : f32
    %33 = vector.broadcast %cst_18 : f32 to vector<16x512xf32>
    %34 = arith.maximumf %32, %33 : vector<16x512xf32>
    %35 = arith.truncf %34 : vector<16x512xf32> to vector<16x512xbf16>
    %c0_19 = arith.constant 0 : index
    %c0_20 = arith.constant 0 : index
    %36 = vector.load %arg7[%c0_19, %c0_20] : memref<512x128xbf16, #tpu.memory_space<vmem>>, vector<512x128xbf16>
    %cst_21 = arith.constant dense<0.000000e+00> : vector<16x128xf32>
    %37 = tpu.matmul %35, %36, %cst_21 {dimension_numbers = #tpu.dot_dimension_numbers<[1], [0], [0], [1], [0, 0, 1, 1], [], []>} : vector<16x512xbf16>, vector<512x128xbf16>, vector<16x128xf32> -> vector<16x128xf32>
    %c0_22 = arith.constant 0 : index
    %c0_23 = arith.constant 0 : index
    %38 = vector.load %arg8[%c0_22, %c0_23] : memref<1x128xf32, #tpu.memory_space<vmem>>, vector<1x128xf32>
    %39 = vector.broadcast %38 : vector<1x128xf32> to vector<16x128xf32>
    %40 = arith.addf %37, %39 : vector<16x128xf32>
    %41 = arith.negf %40 : vector<16x128xf32>
    %42 = math.exp %41 : vector<16x128xf32>
    %cst_24 = arith.constant 1.000000e+00 : f32
    %43 = vector.broadcast %cst_24 : f32 to vector<16x128xf32>
    %44 = arith.addf %43, %42 : vector<16x128xf32>
    %45 = arith.divf %43, %44 : vector<16x128xf32>
    %c0_25 = arith.constant 0 : index
    %c0_26 = arith.constant 0 : index
    %46 = vector.load %arg9[%c0_25, %c0_26] : memref<16x128xf32, #tpu.memory_space<vmem>>, vector<16x128xf32>
    tpu.vector_store %arg9[%c0_25, %c0_26], %45 {strides = array<i32>} : memref<16x128xf32, #tpu.memory_space<vmem>>, vector<16x128xf32>,
    return
  }
  func.func @transform_0(%arg0: i32) -> (i32, i32, i32) {
    %c0_i32 = arith.constant 0 : i32
    %c0_i32_0 = arith.constant 0 : i32
    %c0_i32_1 = arith.constant 0 : i32
    %c0_i32_2 = arith.constant 0 : i32
    return %c0_i32, %c0_i32_0, %c0_i32_1 : i32, i32, i32
  }
  func.func @transform_1(%arg0: i32) -> (i32, i32) {
    %c0_i32 = arith.constant 0 : i32
    %c0_i32_0 = arith.constant 0 : i32
    %c0_i32_1 = arith.constant 0 : i32
    return %c0_i32, %c0_i32_0 : i32, i32
  }
  func.func @transform_2(%arg0: i32) -> (i32, i32) {
    %c0_i32 = arith.constant 0 : i32
    %c0_i32_0 = arith.constant 0 : i32
    %c0_i32_1 = arith.constant 0 : i32
    return %c0_i32, %c0_i32_0 : i32, i32
  }
  func.func @transform_3(%arg0: i32) -> (i32, i32) {
    %c0_i32 = arith.constant 0 : i32
    %c0_i32_0 = arith.constant 0 : i32
    %c0_i32_1 = arith.constant 0 : i32
    return %c0_i32, %c0_i32_0 : i32, i32
  }
  func.func @transform_4(%arg0: i32) -> (i32, i32) {
    %c0_i32 = arith.constant 0 : i32
    %c0_i32_0 = arith.constant 0 : i32
    %c0_i32_1 = arith.constant 0 : i32
    return %c0_i32, %c0_i32_0 : i32, i32
  }
  func.func @transform_5(%arg0: i32) -> (i32, i32) {
    %c0_i32 = arith.constant 0 : i32
    %c0_i32_0 = arith.constant 0 : i32
    %c0_i32_1 = arith.constant 0 : i32
    return %c0_i32, %c0_i32_0 : i32, i32
  }
  func.func @transform_6(%arg0: i32) -> (i32, i32) {
    %c0_i32 = arith.constant 0 : i32
    %c0_i32_0 = arith.constant 0 : i32
    %c0_i32_1 = arith.constant 0 : i32
    return %c0_i32, %c0_i32_0 : i32, i32
  }
  func.func @transform_7(%arg0: i32) -> (i32, i32) {
    %c0_i32 = arith.constant 0 : i32
    %c0_i32_0 = arith.constant 0 : i32
    %c0_i32_1 = arith.constant 0 : i32
    return %c0_i32, %c0_i32_0 : i32, i32
  }
  func.func @transform_8(%arg0: i32) -> (i32, i32) {
    %c0_i32 = arith.constant 0 : i32
    %c0_i32_0 = arith.constant 0 : i32
    %c0_i32_1 = arith.constant 0 : i32
    return %c0_i32, %c0_i32_0 : i32, i32
  }
}

</mosaic_0001>

<bundles_post_ra>
// kernel: detection_model_forward.2
= control target key start
LH: loop header
LB: loop body
LE: loop exit
PB: predicated region body
PF: predicated region fallthrough
CT: control target
= control target key end

     0   :  { %8 = vsyncpa [#allocation3], 0  ;;  %s850_s0 = inlined_call_operand.vmem [shape: bf16[2,64,32], index: 0, kind: input, shape index: {}]   ;;  %s851_s1 = inlined_call_operand.hbm [shape: bf16[32,128], index: 1, kind: input, shape index: {}]   ;;  %s852_s2 = inlined_call_operand.hbm [shape: f32[1,128], index: 2, kind: input, shape index: {}]   ;;  %s853_s3 = inlined_call_operand.vmem [shape: f32[2,2,8,128], index: 3, kind: output, shape index: {}]  }
   0x1   :  { %9 = vsyncpa [#allocation5], 0  ;;  %s741_s12 = smov 0   ;;  %s743_s13 = smov 0  }
   0x2   :  { %s745_s14 = smov 0   ;;  %s747_s15 = smov 0  }
   0x3   :  { %s749_s16 = smov 0  }
   0x4 LB: > { %s494_s17 = sadd.s32 4294967295, %s715_s16   ;;  %s30_s18 = sadd.s32 1, %s707_s14  ;;  %s715_s16 = sphi %s749_s16, %s15_s16   ;;  %s711_s15 = sphi %s747_s15, %s860_s15   ;;  %s707_s14 = sphi %s745_s14, %s859_s14   ;;  %s703_s13 = sphi %s743_s13, %s858_s13   ;;  %s699_s12 = sphi %s741_s12, %s857_s12  }
   0x5   : > { %p32_p0 = scmp.ge.s32.totalorder %s30_s18, 2  ;;  %s34_s19 = sadd.s32 1, %s711_s15 }
   0x6   : > { %p496_p1 = scmp.ge.s32.totalorder %s715_s16, 1  ;;  %p139_p2 = scmp.lt.s32.totalorder %s715_s16, 5 }
   0x7   : > { %s862_s18 = smov (%p32_p0, %s30_s18), 0  ;;  %s864_s19 = smov (!%p32_p0, %s34_s19), %s711_s15 }
   0x8   : > { %p774_p3 = pnand %p496_p1, %p139_p2  ;;  %p36_p4 = scmp.ge.s32.totalorder %s864_s19, 2 }
   0x9   : > { %p778_p5 = scmp.eq.s32.totalorder %s494_s17, 0  ;;  %s717_s22 = smov [#allocation2]  }
   0xa   : > { %p541_p6 = pneg %p774_p3  ;;  %s866_s19 = smov (%p36_p4, %s864_s19), 0 }
   0xb   : > { %s151_s23 = sshll.u32 %s717_s22, 4  ;;  %s152_s23 = int_to_ptr.vmem [resolvable:$true] %s151_s23 }
   0xc   : > { %p788_p7 = pnand %p778_p5, %p541_p6  ;;  %s628_s25 = scalar_lea.vmem %s152_s23, 256 }
   0xd   : > { %p629_p9 = scmp.ne.s32.totalorder %s152_s23, %s628_s25  ;;  %p636_p12 = scmp.lt.s32.totalorder %s152_s23, %s152_s23 }
   0xe   : > { %p619_p8 = pneg %p788_p7  ;;  %p637_p13 = scmp.lt.s32.totalorder %s628_s25, %s628_s25 }
  0x10   : > { %p631_p10 = pnand %p629_p9, %p619_p8  ;;  %p638_p0 = por %p637_p13, %p636_p12 }
  0x12   : > { %p632_p11 = pneg %p631_p10 }
  0x14   : > { %p639_p1 = pnand %p638_p0, %p632_p11 }
  0x16   : > { %642 = shalt.err (!%p639_p1)
}
  0x17   : > { %s718_s26 = smov 64   ;;  %s719_s27 = smov 4  }
  0x18   : > { %544 = dma.hbm_to_vmem [thread:$0]  (!%p788_p7), %s851_s1, 256, %s152_s23, [#allocation3], %s718_s26, %s718_s26, %s719_s27  }
  0x19   : > { %s720_s30 = smov [#allocation4]  }
  0x1a   : > { %s165_s4 = sshll.u32 %s720_s30, 4  ;;  %s166_s4 = int_to_ptr.vmem [resolvable:$true] %s165_s4 }
  0x1b   : > { %s654_s5 = scalar_lea.vmem %s166_s4, 16  ;;  %s661_s6 = scalar_lea.vmem %s166_s4, 32 }
  0x1c   : > { %p655_p2 = scmp.ne.s32.totalorder %s166_s4, %s654_s5  ;;  %p662_p9 = scmp.lt.s32.totalorder %s166_s4, %s166_s4 }
  0x1d   : > { %p663_p10 = scmp.lt.s32.totalorder %s661_s6, %s654_s5 }
  0x1e   : > { %p657_p4 = pnand %p655_p2, %p619_p8 }
  0x1f   : > { %p664_p11 = por %p663_p10, %p662_p9 }
  0x20   : > { %p658_p6 = pneg %p657_p4 }
  0x22   : > { %p665_p12 = pnand %p664_p11, %p658_p6 }
  0x24   : > { %668 = shalt.err (!%p665_p12)
}
  0x25   : > { %547 = dma.hbm_to_vmem [thread:$0]  (!%p788_p7), %s852_s2, 16, %s166_s4, [#allocation5]  }
  0x26   : > { %193 = sbr.rel (%p774_p3) target bundleno = 297 (0x129), region = 32 }
  0x2b   : > { %690 = dma.done.wait (%p778_p5), [#allocation3], 256  }
  0x2c   : > { %692 = vsyncadd (%p778_p5), [#allocation3], 4294967040 }
  0x2d   : > { %694 = dma.done.wait (%p778_p5), [#allocation5], 16  }
  0x2e   : > { %696 = vsyncadd (%p778_p5), [#allocation5], 4294967280  ;;  %s503_s9 = sshll.u32 %s699_s12, 2  ;;  %p231_p7 = scmp.lt.s32.totalorder %s703_s13, 1  ;;  %v597_v0 = vld [vmem:[#allocation2 + $0x8] sm:$0xff]   ;;  %v598_v1 = vld [vmem:[#allocation2] sm:$0xff]  }
  0x2f   : > { %p233_p8 = scmp.lt.s32.totalorder %s503_s9, 7  ;;  %vm292_vm0 = vcmask 261120   ;;  %525 = vmatprep.subr.bf16.mxu0 %v597_v0  ;;  %v508_v4 = vld [vmem:[#allocation4] ss:$0 sm:$0xff]  ;;  %p243_p3 = scmp.lt.s32.totalorder %s699_s12, 1 }
  0x30   : > { %s868_s13 = smov (!%p231_p7, %s703_s13), 1  ;;  %526 = vmatpush3.bf16.msra.mxu0 %v597_v0 }
  0x31   : > { %s870_s9 = smov (!%p233_p8, %s503_s9), 7  ;;  %s504_s10 = sshll.u32 %s868_s13, 3  ;;  %527 = vmatprep.subr.bf16.mxu0 %v598_v1 }
  0x32   : > { %s236_s11 = sadd.s32 %s504_s10, %s870_s9  ;;  %s872_s12 = smov (!%p243_p3, %s699_s12), 1 }
  0x33   : > { %s505_s17 = sshll.u32 %s236_s11, 2  ;;  %s506_s21 = sshll.u32 %s868_s13, 1 }
  0x34   : > { %s238_s23 = scalar_lea.vmem %s850_s0, %s505_s17  ;;  %528 = vmatpush3.bf16.msra.mxu0 %v598_v1  ;;  %s246_s24 = sadd.s32 %s506_s21, %s872_s12 }
  0x35   : > { %v599_v2 = vld [vmem:[%s238_s23] sm:$0xff]   ;;  %v600_v3 = vld [vmem:[%s238_s23 + $0x8] sm:$0xff]   ;;  %s507_s25 = sshll.u32 %s246_s24, 3 }
  0x36   : > { %529 = vmatprep.mubr.msk.bf16.mxu0 %vm292_vm0, %v599_v2  ;;  %s248_s28 = scalar_lea.vmem %s853_s3, %s507_s25 }
  0x37   : > { %530 = vmatmul.mubr.msk.bf16.vlgmr.msra.gmra.mxu0 %vm292_vm0, %v600_v3 }
  0xf7   : > { %v531_v5 = vpop.f32.mrf.mxu0 }
  0xf8   : > { %v342_v6 = vadd.f32 %v531_v5, %v508_v4 }
  0xf9   : > { %v333_v7 = vpop.f32.mrf.mxu0 }
  0xfa   : > { %v517_v8 = vmul.f32 -1.442695, %v342_v6  ;;  %v334_v9 = vadd.f32 %v508_v4, %v333_v7 }
  0xfb   : > { %v532_v10 = vpop.f32.mrf.mxu0 }
  0xfc   : > { %v515_v11 = vmul.f32 -1.442695, %v334_v9  ;;  %v345_v12 = vadd.f32 %v532_v10, %v508_v4  ;;  %601 = vpow2.f32 %v517_v8 }
  0xfd   : > { %v336_v13 = vpop.f32.mrf.mxu0 }
  0xfe   : > { %603 = vpow2.f32 %v515_v11  ;;  %v518_v14 = vmul.f32 -1.442695, %v345_v12  ;;  %v337_v15 = vadd.f32 %v508_v4, %v336_v13 }
 0x100   : > { %605 = vpow2.f32 %v518_v14  ;;  %v516_v16 = vmul.f32 -1.442695, %v337_v15 }
 0x102   : > { %607 = vpow2.f32 %v516_v16 }
 0x109   : > { %v602_v17 = vpop.eup %601 }
 0x10a   : > { %v362_v21 = vadd.f32 1.0, %v602_v17 }
 0x10b   : > { %v604_v18 = vpop.eup %603 }
 0x10c   : > { %v360_v19 = vadd.f32 1.0, %v604_v18 }
 0x10d   : > { %v606_v20 = vpop.eup %605 }
 0x10e   : > { %609 = vrcp.f32 %v360_v19  ;;  %v363_v23 = vadd.f32 1.0, %v606_v20 }
 0x10f   : > { %v608_v22 = vpop.eup %607  ;;  %611 = vrcp.f32 %v362_v21 }
 0x110   : > { %v361_v24 = vadd.f32 1.0, %v608_v22 }
 0x112   : > { %613 = vrcp.f32 %v361_v24 }
 0x113   : > { %615 = vrcp.f32 %v363_v23 }
 0x11b   : > { %v610_v25 = vpop.eup %609 }
 0x11c   : > { %v612_v26 = vpop.eup %611  ;;  %v372_v28 = vmul.f32 %v610_v25, %v334_v9 }
 0x11d   : > { %v374_v31 = vmul.f32 %v612_v26, %v342_v6 }
 0x11f   : > { %v614_v27 = vpop.eup %613 }
 0x120   : > { %v373_v29 = vmul.f32 %v614_v27, %v337_v15  ;;  %v616_v30 = vpop.eup %615 }
 0x121   : > { %v375_v33 = vmul.f32 %v616_v30, %v345_v12 }
 0x122   : > { %v376_v32 = vadd.f32 %v373_v29, %v372_v28 }
 0x124   : > { %v377_v34 = vadd.f32 %v376_v32, %v374_v31 }
 0x126   : > { %v378_v35 = vadd.f32 %v377_v34, %v375_v33 }
 0x128   : > { %381 = vst [vmem:[%s248_s28] sm:$0xff] %v378_v35 }
 0x129 PF: > { %s15_s16 = sadd.s32 1, %s715_s16   ;;  %s857_s12 = smov %s707_s14 }
 0x12a   : > { %p12_p5 = scmp.ge.s32.totalorder %s15_s16, 6   ;;  %s858_s13 = smov %s711_s15 }
 0x12b   : > { %s859_s14 = smov %s862_s18  ;;  %s860_s15 = smov %s866_s19 }
 0x12c   :  { %14 = sbr.rel (!%p12_p5) target bundleno = 4 (0x4), region = 75 }
 0x131   :  { %409 = vsyncpa [#allocation3], 1 }
 0x132   :  { %411 = vsyncpa [#allocation3 + $0x1], 1 }
 0x133   :  { %412 = vsyncpa [#allocation5], 1 }

// kernel: detection_model_forward.3
= control target key start
LH: loop header
LB: loop body
LE: loop exit
PB: predicated region body
PF: predicated region fallthrough
CT: control target
= control target key end

     0   :  { %13 = vsyncpa [#allocation3], 0  ;;  %s6607_s0 = inlined_call_operand.vmem [shape: f32[16,16,128], index: 0, kind: input, shape index: {}]   ;;  %s6608_s1 = inlined_call_operand.vmem [shape: f32[1,128], index: 1, kind: input, shape index: {}]   ;;  %s6609_s2 = inlined_call_operand.hbm [shape: bf16[128,1280], index: 2, kind: input, shape index: {}]   ;;  %s6610_s3 = inlined_call_operand.vmem [shape: f32[1,1280], index: 3, kind: input, shape index: {}]   ;;  %s6611_s4 = inlined_call_operand.vmem [shape: bf16[1280,512], index: 4, kind: input, shape index: {}]   ;;  %s6612_s5 = inlined_call_operand.vmem [shape: f32[1,512], index: 5, kind: input, shape index: {}]   ;;  %s6613_s6 = inlined_call_operand.hbm [shape: bf16[512,128], index: 6, kind: input, shape index: {}]   ;;  %s6614_s7 = inlined_call_operand.vmem [shape: f32[1,128], index: 7, kind: input, shape index: {}]   ;;  %s6615_s8 = inlined_call_operand.vmem [shape: f32[16,128], index: 8, kind: output, shape index: {}]  }
   0x1   :  { %14 = vsyncpa [#allocation5], 0  ;;  %s5257_s27 = smov [#allocation2]  }
   0x2   :  { %s24_s28 = sshll.u32 %s5257_s27, 4  ;;  %s25_s28 = int_to_ptr.vmem [resolvable:$true] %s24_s28 }
   0x3   :  { %s5221_s29 = scalar_lea.vmem %s25_s28, 10240  ;;  %p5226_p1 = scmp.lt.s32.totalorder %s25_s28, %s25_s28 }
   0x4   :  { %p5222_p0 = scmp.ne.s32.totalorder %s25_s28, %s5221_s29  ;;  %p5227_p2 = scmp.lt.s32.totalorder %s5221_s29, %s5221_s29 }
   0x6   :  { %p5228_p3 = por %p5227_p2, %p5226_p1 }
   0x8   :  { %p5229_p4 = pnand %p5228_p3, %p5222_p0 }
   0xa   :  { %5232 = shalt.err (!%p5229_p4)
}
   0xb   :  { %s5258_s30 = smov 640   ;;  %s5259_s9 = smov 40  }
   0xc   :  { %30 = dma.hbm_to_vmem [thread:$0]  %s6609_s2, 10240, %s25_s28, [#allocation3], %s5258_s30, %s5258_s30, %s5259_s9  }
   0xd   :  { %s5260_s12 = smov [#allocation4]  }
   0xe   :  { %s42_s13 = sshll.u32 %s5260_s12, 4  ;;  %s43_s13 = int_to_ptr.vmem [resolvable:$true] %s42_s13 }
   0xf   :  { %s5241_s14 = scalar_lea.vmem %s43_s13, 4096  ;;  %p5246_p6 = scmp.lt.s32.totalorder %s43_s13, %s43_s13 }
  0x10   :  { %p5242_p5 = scmp.ne.s32.totalorder %s43_s13, %s5241_s14  ;;  %p5247_p7 = scmp.lt.s32.totalorder %s5241_s14, %s5241_s14 }
  0x12   :  { %p5248_p8 = por %p5247_p7, %p5246_p6 }
  0x14   :  { %p5249_p9 = pnand %p5248_p8, %p5242_p5 }
  0x16   :  { %5252 = shalt.err (!%p5249_p9)
}
  0x17   :  { %s5261_s15 = smov 64   ;;  %s5262_s16 = smov 4  }
  0x18   :  { %48 = dma.hbm_to_vmem [thread:$0]  %s6613_s6, 4096, %s43_s13, [#allocation5], %s5261_s15, %s5261_s15, %s5262_s16  }
  0x19   :  { %5253 = dma.done.wait [#allocation3], 10240  }
  0x1a   :  { %5254 = vsyncadd [#allocation3], 4294957056 }
  0x1b   :  { %5255 = dma.done.wait [#allocation5], 4096  }
  0x1c   :  { %5256 = vsyncadd [#allocation5], 4294963200  ;;  %v5263_v0 = vmov 0   ;;  %v4489_v1 = vld [vmem:[#allocation2 + $0x234] ss:$40 sps:$4 sm:$0xff]   ;;  %v58_v36 = vld [vmem:[%s6607_s0] sm:$0xff]  ;;  %v212_v43 = vlaneseq }
  0x1d   :  { %900 = vmatprep.mubr.bf16.mxu0 %v5263_v0  ;;  %943 = vmatprep.mubr.bf16.mxu1 %v5263_v0  ;;  %v4491_v2 = vld [vmem:[#allocation2 + $0x23c] ss:$40 sps:$4 sm:$0xff]   ;;  %v4493_v3 = vld [vmem:[#allocation2 + $0x230] ss:$40 sps:$4 sm:$0xff]   ;;  %v4497_v6 = vld [vmem:[#allocation2 + $0x1ec] ss:$40 sps:$4 sm:$0xff]  }
  0x1e   :  { %868 = vmatprep.subr.bf16.mxu0 %v4489_v1  ;;  %v4494_v4 = vld [vmem:[#allocation2 + $0x238] ss:$40 sps:$4 sm:$0xff]   ;;  %911 = vmatprep.subr.bf16.mxu1 %v4491_v2  ;;  %v4495_v5 = vld [vmem:[#allocation2 + $0x1e4] ss:$40 sps:$4 sm:$0xff]   ;;  %v4500_v8 = vld [vmem:[#allocation2 + $0x1e8] ss:$40 sps:$4 sm:$0xff]  }
  0x1f   :  { %869 = vmatpush1.bf16.msra.mxu0 %v4493_v3  ;;  %912 = vmatpush1.bf16.msra.mxu1 %v4494_v4  ;;  %v4499_v7 = vld [vmem:[#allocation2 + $0x1e0] ss:$40 sps:$4 sm:$0xff]   ;;  %v4501_v9 = vld [vmem:[#allocation2 + $0x194] ss:$40 sps:$4 sm:$0xff]   ;;  %v4505_v11 = vld [vmem:[#allocation2 + $0x190] ss:$40 sps:$4 sm:$0xff]  }
  0x20   :  { %870 = vmatprep.subr.bf16.mxu0 %v4495_v5  ;;  %913 = vmatprep.subr.bf16.mxu1 %v4497_v6  ;;  %v4503_v10 = vld [vmem:[#allocation2 + $0x19c] ss:$40 sps:$4 sm:$0xff]   ;;  %v4506_v12 = vld [vmem:[#allocation2 + $0x198] ss:$40 sps:$4 sm:$0xff]   ;;  %v4509_v14 = vld [vmem:[#allocation2 + $0x14c] ss:$40 sps:$4 sm:$0xff]  }
  0x21   :  { %v4507_v13 = vld [vmem:[#allocation2 + $0x144] ss:$40 sps:$4 sm:$0xff]   ;;  %v4511_v15 = vld [vmem:[#allocation2 + $0x140] ss:$40 sps:$4 sm:$0xff]   ;;  %v4513_v17 = vld [vmem:[#allocation2 + $0xf4] ss:$40 sps:$4 sm:$0xff]  }
  0x22   :  { %v4512_v16 = vld [vmem:[#allocation2 + $0x148] ss:$40 sps:$4 sm:$0xff]   ;;  %v4515_v18 = vld [vmem:[#allocation2 + $0xfc] ss:$40 sps:$4 sm:$0xff]   ;;  %v4518_v20 = vld [vmem:[#allocation2 + $0xf8] ss:$40 sps:$4 sm:$0xff]  }
  0x23   :  { %871 = vmatpush1.bf16.msra.mxu0 %v4499_v7  ;;  %914 = vmatpush1.bf16.msra.mxu1 %v4500_v8  ;;  %v4517_v19 = vld [vmem:[#allocation2 + $0xf0] ss:$40 sps:$4 sm:$0xff]   ;;  %v4519_v21 = vld [vmem:[#allocation2 + $0xa4] ss:$40 sps:$4 sm:$0xff]   ;;  %v4523_v23 = vld [vmem:[#allocation2 + $0xa0] ss:$40 sps:$4 sm:$0xff]  }
  0x24   :  { %872 = vmatprep.subr.bf16.mxu0 %v4501_v9  ;;  %915 = vmatprep.subr.bf16.mxu1 %v4503_v10  ;;  %v4521_v22 = vld [vmem:[#allocation2 + $0xac] ss:$40 sps:$4 sm:$0xff]   ;;  %v4524_v24 = vld [vmem:[#allocation2 + $0xa8] ss:$40 sps:$4 sm:$0xff]   ;;  %v4527_v26 = vld [vmem:[#allocation2 + $0x5c] ss:$40 sps:$4 sm:$0xff]  }
  0x25   :  { %v4525_v25 = vld [vmem:[#allocation2 + $0x54] ss:$40 sps:$4 sm:$0xff]   ;;  %v4529_v27 = vld [vmem:[#allocation2 + $0x50] ss:$40 sps:$4 sm:$0xff]   ;;  %v4531_v29 = vld [vmem:[#allocation2 + $0x4] ss:$40 sps:$4 sm:$0xff]  }
  0x26   :  { %v4530_v28 = vld [vmem:[#allocation2 + $0x58] ss:$40 sps:$4 sm:$0xff]   ;;  %v4533_v30 = vld [vmem:[#allocation2 + $0xc] ss:$40 sps:$4 sm:$0xff]   ;;  %v4536_v32 = vld [vmem:[#allocation2 + $0x8] ss:$40 sps:$4 sm:$0xff]  }
  0x27   :  { %873 = vmatpush1.bf16.msra.mxu0 %v4505_v11  ;;  %916 = vmatpush1.bf16.msra.mxu1 %v4506_v12  ;;  %v4535_v31 = vld [vmem:[#allocation2] ss:$40 sps:$4 sm:$0xff]   ;;  %v4539_v33 = vld [vmem:[#allocation2 + $0x244] ss:$40 sps:$4 sm:$0xff]   ;;  %v60_v39 = vld [vmem:[%s6607_s0 + $0x10] sm:$0xff]  ;;  %v5389_v63 = vshrl.u32 %v212_v43, 7 }
  0x28   :  { %874 = vmatprep.subr.bf16.mxu0 %v4507_v13  ;;  %917 = vmatprep.subr.bf16.mxu1 %v4509_v14  ;;  %v4542_v34 = vld [vmem:[#allocation2 + $0x24c] ss:$40 sps:$4 sm:$0xff]   ;;  %v5320_v35 = vld [vmem:[%s6608_s1] sm:$0x1]  ;;  %v61_v40 = vld [vmem:[%s6607_s0 + $0x18] sm:$0xff]  ;;  %vm432_vm0 = vcmask 1041409  }
  0x29   :  { %v3982_v37 = vmul.f32 -1.442695, %v5320_v35  ;;  %v59_v38 = vld [vmem:[%s6607_s0 + $0x8] sm:$0xff]  ;;  %v62_v41 = vld [vmem:[%s6607_s0 + $0x20] sm:$0xff]  ;;  %v64_v44 = vld [vmem:[%s6607_s0 + $0x30] sm:$0xff]  ;;  %v97_v55 = vadd.f32 %v61_v40, %v60_v39  ;;  %vm435_vm1 = vcmask 1042434  }
  0x2a   :  { %v63_v42 = vld [vmem:[%s6607_s0 + $0x28] sm:$0xff]  ;;  %v65_v45 = vld [vmem:[%s6607_s0 + $0x38] sm:$0xff]  ;;  %v90_v46 = vadd.f32 %v59_v38, %v58_v36  ;;  %v66_v47 = vld [vmem:[%s6607_s0 + $0x40] sm:$0xff]  ;;  %vm438_vm2 = vcmask 1043459   ;;  %vm441_vm3 = vcmask 1044484   ;;  %vm444_vm4 = vcmask 1045509  }
  0x2b   :  { %875 = vmatpush1.bf16.msra.mxu0 %v4511_v15  ;;  %918 = vmatpush1.bf16.msra.mxu1 %v4512_v16  ;;  %5121 = vpow2.f32 %v3982_v37  ;;  %v67_v48 = vld [vmem:[%s6607_s0 + $0x48] sm:$0xff]  ;;  %v68_v49 = vld [vmem:[%s6607_s0 + $0x50] sm:$0xff]  ;;  %v69_v50 = vld [vmem:[%s6607_s0 + $0x58] sm:$0xff]  ;;  %v104_v56 = vadd.f32 %v63_v42, %v62_v41  ;;  %v111_v7 = vadd.f32 %v65_v45, %v64_v44  ;;  %v98_v9 = vrot.slane %v97_v55, 4 }
  0x2c   :  { %876 = vmatprep.subr.bf16.mxu0 %v4513_v17  ;;  %919 = vmatprep.subr.bf16.mxu1 %v4515_v18  ;;  %v70_v51 = vld [vmem:[%s6607_s0 + $0x60] sm:$0xff]  ;;  %v71_v52 = vld [vmem:[%s6607_s0 + $0x68] sm:$0xff]  ;;  %v72_v53 = vld [vmem:[%s6607_s0 + $0x70] sm:$0xff]  ;;  %v91_v5 = vrot.slane %v90_v46, 4  ;;  %v118_v11 = vadd.f32 %v67_v48, %v66_v47  ;;  %v125_v14 = vadd.f32 %v69_v50, %v68_v49  ;;  %v5416_v17 = vsub.s32 0, %v5389_v63 }
  0x2d   :  { %v73_v54 = vld [vmem:[%s6607_s0 + $0x78] sm:$0xff]  ;;  %v76_v57 = vld [vmem:[%s6607_s0 + $0x90] sm:$0xff]  ;;  %v78_v59 = vld [vmem:[%s6607_s0 + $0xa0] sm:$0xff]  ;;  %v105_v10 = vrot.slane %v104_v56, 4  ;;  %v132_v15 = vadd.f32 %v71_v52, %v70_v51  ;;  %vm447_vm5 = vcmask 1046534   ;;  %vm450_vm6 = vcmask 1047559  }
  0x2e   :  { %v77_v58 = vld [vmem:[%s6607_s0 + $0x98] sm:$0xff]  ;;  %v79_v60 = vld [vmem:[%s6607_s0 + $0xa8] sm:$0xff]  ;;  %v80_v61 = vld [vmem:[%s6607_s0 + $0xb0] sm:$0xff]  ;;  %v139_v16 = vadd.f32 %v73_v54, %v72_v53 }
  0x2f   :  { %877 = vmatpush1.bf16.msra.mxu0 %v4517_v19  ;;  %920 = vmatpush1.bf16.msra.mxu1 %v4518_v20  ;;  %v81_v62 = vld [vmem:[%s6607_s0 + $0xb8] sm:$0xff]  ;;  %v74_v1 = vld [vmem:[%s6607_s0 + $0x80] sm:$0xff]  ;;  %v75_v2 = vld [vmem:[%s6607_s0 + $0x88] sm:$0xff]  ;;  %v92_v20 = vadd.f32 %v91_v5, %v90_v46 }
  0x30   :  { %878 = vmatprep.subr.bf16.mxu0 %v4519_v21  ;;  %921 = vmatprep.subr.bf16.mxu1 %v4521_v22  ;;  %v82_v3 = vld [vmem:[%s6607_s0 + $0xc0] sm:$0xff]  ;;  %v83_v4 = vld [vmem:[%s6607_s0 + $0xc8] sm:$0xff]  ;;  %v84_v6 = vld [vmem:[%s6607_s0 + $0xd0] sm:$0xff]  ;;  %v153_v21 = vadd.f32 %v77_v58, %v76_v57  ;;  %v160_v22 = vadd.f32 %v79_v60, %v78_v59  ;;  %v140_v36 = vrot.slane %v139_v16, 4 }
  0x31   :  { %v85_v8 = vld [vmem:[%s6607_s0 + $0xd8] sm:$0xff]  ;;  %v86_v12 = vld [vmem:[%s6607_s0 + $0xe0] sm:$0xff]  ;;  %v87_v13 = vld [vmem:[%s6607_s0 + $0xe8] sm:$0xff]  ;;  %v93_v42 = vrot.slane %v92_v20, 2 }
  0x32   :  { %v88_v18 = vld [vmem:[%s6607_s0 + $0xf0] sm:$0xff]  ;;  %v89_v19 = vld [vmem:[%s6607_s0 + $0xf8] sm:$0xff]  ;;  %v154_v38 = vrot.slane %v153_v21, 4  ;;  %v161_v39 = vrot.slane %v160_v22, 4  ;;  %v141_v51 = vadd.f32 %v140_v36, %v139_v16 }
  0x33   :  { %879 = vmatpush1.bf16.msra.mxu0 %v4523_v23  ;;  %922 = vmatpush1.bf16.msra.mxu1 %v4524_v24  ;;  %v167_v23 = vadd.f32 %v81_v62, %v80_v61  ;;  %v112_v24 = vrot.slane %v111_v7, 4  ;;  %v195_v37 = vadd.f32 %v89_v19, %v88_v18  ;;  %v94_v61 = vadd.f32 %v93_v42, %v92_v20 }
  0x34   :  { %880 = vmatprep.subr.bf16.mxu0 %v4525_v25  ;;  %923 = vmatprep.subr.bf16.mxu1 %v4527_v26  ;;  %v146_v25 = vadd.f32 %v75_v2, %v74_v1  ;;  %v174_v26 = vadd.f32 %v83_v4, %v82_v3  ;;  %v155_v54 = vadd.f32 %v154_v38, %v153_v21  ;;  %v142_v5 = vrot.slane %v141_v51, 2 }
  0x35   :  { %v168_v40 = vrot.slane %v167_v23, 4  ;;  %v113_v46 = vadd.f32 %v112_v24, %v111_v7  ;;  %v196_v52 = vrot.slane %v195_v37, 4 }
  0x36   :  { %v147_v43 = vrot.slane %v146_v25, 4  ;;  %v175_v44 = vrot.slane %v174_v26, 4 }
  0x37   :  { %881 = vmatpush1.bf16.msra.mxu0 %v4529_v27  ;;  %924 = vmatpush1.bf16.msra.mxu1 %v4530_v28  ;;  %v181_v27 = vadd.f32 %v85_v8, %v84_v6  ;;  %v99_v28 = vadd.f32 %v98_v9, %v97_v55  ;;  %v162_v55 = vadd.f32 %v161_v39, %v160_v22  ;;  %v114_v62 = vrot.slane %v113_v46, 2 }
  0x38   :  { %882 = vmatprep.subr.bf16.mxu0 %v4531_v29  ;;  %925 = vmatprep.subr.bf16.mxu1 %v4533_v30  ;;  %v106_v29 = vadd.f32 %v105_v10, %v104_v56  ;;  %v119_v30 = vrot.slane %v118_v11, 4  ;;  %v169_v56 = vadd.f32 %v168_v40, %v167_v23  ;;  %v148_v58 = vadd.f32 %v147_v43, %v146_v25 }
  0x39   :  { %v182_v45 = vrot.slane %v181_v27, 4  ;;  %v100_v53 = vrot.slane %v99_v28, 2  ;;  %v176_v59 = vadd.f32 %v175_v44, %v174_v26  ;;  %v197_v6 = vadd.f32 %v196_v52, %v195_v37 }
  0x3a   :  { %v120_v47 = vadd.f32 %v119_v30, %v118_v11  ;;  %v107_v57 = vrot.slane %v106_v29, 2  ;;  %v156_v8 = vrot.slane %v155_v54, 2  ;;  %v163_v9 = vrot.slane %v162_v55, 2 }
  0x3b   :  { %883 = vmatpush1.bf16.msra.mxu0 %v4535_v31  ;;  %926 = vmatpush1.bf16.msra.mxu1 %v4536_v32  ;;  %v188_v31 = vadd.f32 %v87_v13, %v86_v12  ;;  %v5122_v32 = vpop.eup %5121  ;;  %v183_v60 = vadd.f32 %v182_v45, %v181_v27  ;;  %v101_v7 = vadd.f32 %v100_v53, %v99_v28  ;;  %v170_v10 = vrot.slane %v169_v56, 2 }
  0x3c   :  { %954 = vmatprep.subr.bf16.mxu0 %v4539_v33  ;;  %997 = vmatprep.subr.bf16.mxu1 %v4542_v34  ;;  %v126_v33 = vrot.slane %v125_v14, 4  ;;  %v133_v34 = vrot.slane %v132_v15, 4  ;;  %v206_v41 = vadd.f32 1.0, %v5122_v32  ;;  %v121_v1 = vrot.slane %v120_v47, 2 }
  0x3d   :  { %v189_v48 = vrot.slane %v188_v31, 4  ;;  %v108_v11 = vadd.f32 %v107_v57, %v106_v29  ;;  %v149_v12 = vrot.slane %v148_v58, 2  ;;  %v177_v13 = vrot.slane %v176_v59, 2 }
  0x3e   :  { %5123 = vrcp.f32 %v206_v41  ;;  %v127_v49 = vadd.f32 %v126_v33, %v125_v14  ;;  %v134_v50 = vadd.f32 %v133_v34, %v132_v15  ;;  %v184_v14 = vrot.slane %v183_v60, 2 }
  0x3f   :  { %v190_v2 = vadd.f32 %v189_v48, %v188_v31  ;;  %v95_v15 = vrot.slane %v94_v61, 1  ;;  %v115_v16 = vadd.f32 %v114_v62, %v113_v46  ;;  %v122_v18 = vadd.f32 %v121_v1, %v120_v47 }
  0x40   :  { %v128_v3 = vrot.slane %v127_v49, 2  ;;  %v135_v4 = vrot.slane %v134_v50, 2  ;;  %v143_v22 = vadd.f32 %v142_v5, %v141_v51  ;;  %v198_v23 = vrot.slane %v197_v6, 2 }
  0x41   :  { %v191_v19 = vrot.slane %v190_v2, 2  ;;  %v102_v24 = vrot.slane %v101_v7, 1  ;;  %v157_v25 = vadd.f32 %v156_v8, %v155_v54  ;;  %v164_v26 = vadd.f32 %v163_v9, %v162_v55 }
  0x42   :  { %v129_v20 = vadd.f32 %v128_v3, %v127_v49  ;;  %v136_v21 = vadd.f32 %v135_v4, %v134_v50  ;;  %v171_v27 = vadd.f32 %v170_v10, %v169_v56  ;;  %v109_v28 = vrot.slane %v108_v11, 1 }
  0x43   :  { %v150_v30 = vadd.f32 %v149_v12, %v148_v58  ;;  %v178_v31 = vadd.f32 %v177_v13, %v176_v59  ;;  %v185_v32 = vadd.f32 %v184_v14, %v183_v60  ;;  %v96_v29 = vadd.f32 %v95_v15, %v94_v61 }
  0x44   :  { %v116_v33 = vrot.slane %v115_v16, 1  ;;  %v123_v34 = vrot.slane %v122_v18, 1  ;;  %v192_v36 = vadd.f32 %v191_v19, %v190_v2  ;;  %v130_v38 = vrot.slane %v129_v20, 1 }
  0x45   :  { %v137_v39 = vrot.slane %v136_v21, 1  ;;  %v144_v40 = vrot.slane %v143_v22, 1  ;;  %v199_v41 = vadd.f32 %v198_v23, %v197_v6  ;;  %v158_v42 = vrot.slane %v157_v25, 1 }
  0x46   :  { %v165_v43 = vrot.slane %v164_v26, 1  ;;  %v172_v44 = vrot.slane %v171_v27, 1  ;;  %v103_v46 = vadd.f32 %v102_v24, %v101_v7  ;;  %v151_v47 = vrot.slane %v150_v30, 1 }
  0x47   :  { %v179_v48 = vrot.slane %v178_v31, 1  ;;  %v186_v49 = vrot.slane %v185_v32, 1  ;;  %v110_v50 = vadd.f32 %v109_v28, %v108_v11  ;;  %v117_v51 = vadd.f32 %v116_v33, %v115_v16 }
  0x48   :  { %v193_v52 = vrot.slane %v192_v36, 1  ;;  %v124_v54 = vadd.f32 %v123_v34, %v122_v18  ;;  %v131_v55 = vadd.f32 %v130_v38, %v129_v20  ;;  %v138_v56 = vadd.f32 %v137_v39, %v136_v21 }
  0x49   :  { %v200_v57 = vrot.slane %v199_v41, 1  ;;  %v159_v58 = vadd.f32 %v158_v42, %v157_v25  ;;  %v166_v59 = vadd.f32 %v165_v43, %v164_v26  ;;  %v173_v60 = vadd.f32 %v172_v44, %v171_v27 }
  0x4a   :  { %v145_v62 = vadd.f32 %v144_v40, %v143_v22  ;;  %v152_v1 = vadd.f32 %v151_v47, %v150_v30  ;;  %v187_v2 = vadd.f32 %v186_v49, %v185_v32  ;;  %v194_v3 = vadd.f32 %v193_v52, %v192_v36 }
  0x4b   :  { %v5124_v37 = vpop.eup %5123  ;;  %v201_v7 = vadd.f32 %v200_v57, %v199_v41 }
  0x4c   :  { %v209_v45 = vmul.f32 %v5124_v37, %v5320_v35  ;;  %v180_v35 = vadd.f32 %v179_v48, %v178_v31 }
  0x4e   :  { %v210_v53 = vmul.f32 0.0, %v209_v45 }
  0x50   :  { %v215_v61 = vrot.slane %v210_v53, %v5416_v17 }
  0x52   :  { %v218_v4 = vsub.f32 %v103_v46, %v215_v61  ;;  %v219_v5 = vsub.f32 %v110_v50, %v215_v61  ;;  %v220_v6 = vsub.f32 %v117_v51, %v215_v61  ;;  %v217_v8 = vsub.f32 %v96_v29, %v215_v61 }
  0x53   :  { %v221_v9 = vsub.f32 %v124_v54, %v215_v61  ;;  %v222_v10 = vsub.f32 %v131_v55, %v215_v61  ;;  %v223_v11 = vsub.f32 %v138_v56, %v215_v61  ;;  %v226_v12 = vsub.f32 %v159_v58, %v215_v61 }
  0x54   :  { %v227_v13 = vsub.f32 %v166_v59, %v215_v61  ;;  %v228_v14 = vsub.f32 %v173_v60, %v215_v61  ;;  %v224_v15 = vsub.f32 %v145_v62, %v215_v61  ;;  %v225_v16 = vsub.f32 %v152_v1, %v215_v61 }
  0x55   :  { %v229_v18 = vsub.f32 %v180_v35, %v215_v61  ;;  %v230_v19 = vsub.f32 %v187_v2, %v215_v61  ;;  %v231_v20 = vsub.f32 %v194_v3, %v215_v61  ;;  %v234_v21 = vmul.f32 0.015625, %v218_v4 }
  0x56   :  { %v235_v22 = vmul.f32 0.015625, %v219_v5  ;;  %v236_v23 = vmul.f32 0.015625, %v220_v6  ;;  %v232_v24 = vsub.f32 %v201_v7, %v215_v61  ;;  %v233_v25 = vmul.f32 0.015625, %v217_v8 }
  0x57   :  { %v237_v26 = vmul.f32 0.015625, %v221_v9  ;;  %v238_v27 = vmul.f32 0.015625, %v222_v10  ;;  %v239_v28 = vmul.f32 0.015625, %v223_v11  ;;  %v242_v30 = vmul.f32 0.015625, %v226_v12 }
  0x58   :  { %v243_v31 = vmul.f32 0.015625, %v227_v13  ;;  %v244_v32 = vmul.f32 0.015625, %v228_v14  ;;  %v240_v29 = vmul.f32 0.015625, %v224_v15  ;;  %v241_v33 = vmul.f32 0.015625, %v225_v16 }
  0x59   :  { %v245_v34 = vmul.f32 0.015625, %v229_v18  ;;  %v246_v36 = vmul.f32 0.015625, %v230_v19  ;;  %v247_v37 = vmul.f32 0.015625, %v231_v20  ;;  %v250_v38 = vpack.c.bf16 %v234_v21, %v234_v21 }
  0x5a   :  { %v251_v39 = vpack.c.bf16 %v235_v22, %v235_v22  ;;  %v252_v40 = vpack.c.bf16 %v236_v23, %v236_v23  ;;  %v248_v41 = vmul.f32 0.015625, %v232_v24  ;;  %v249_v42 = vpack.c.bf16 %v233_v25, %v233_v25 }
  0x5b   :  { %v253_v43 = vpack.c.bf16 %v237_v26, %v237_v26  ;;  %v254_v44 = vpack.c.bf16 %v238_v27, %v238_v27  ;;  %v255_v45 = vpack.c.bf16 %v239_v28, %v239_v28  ;;  %v258_v46 = vpack.c.bf16 %v242_v30, %v242_v30 }
  0x5c   :  { %v259_v47 = vpack.c.bf16 %v243_v31, %v243_v31  ;;  %v260_v48 = vpack.c.bf16 %v244_v32, %v244_v32  ;;  %v256_v49 = vpack.c.bf16 %v240_v29, %v240_v29  ;;  %v257_v50 = vpack.c.bf16 %v241_v33, %v241_v33  ;;  %v4537_v29 = vld [vmem:[#allocation2 + $0x240] ss:$40 sps:$4 sm:$0xff]  }
  0x5d   :  { %v261_v51 = vpack.c.bf16 %v245_v34, %v245_v34  ;;  %v262_v52 = vpack.c.bf16 %v246_v36, %v246_v36  ;;  %v263_v53 = vpack.c.bf16 %v247_v37, %v247_v37  ;;  %v416_v54 = vunpack.c.l.b16 %v250_v38  ;;  %v4540_v33 = vld [vmem:[#allocation2 + $0x248] ss:$40 sps:$4 sm:$0xff]  }
  0x5e   :  { %v417_v55 = vunpack.c.l.b16 %v251_v39  ;;  %v418_v56 = vunpack.c.l.b16 %v252_v40  ;;  %v264_v57 = vpack.c.bf16 %v248_v41, %v248_v41  ;;  %v415_v58 = vunpack.c.l.b16 %v249_v42  ;;  %v4545_v39 = vld [vmem:[#allocation2 + $0x1f4] ss:$40 sps:$4 sm:$0xff]  }
  0x5f   :  { %v419_v59 = vunpack.c.l.b16 %v253_v43  ;;  %v420_v60 = vunpack.c.l.b16 %v254_v44  ;;  %v421_v61 = vunpack.c.l.b16 %v255_v45  ;;  %v424_v62 = vunpack.c.l.b16 %v258_v46  ;;  %v4548_v40 = vld [vmem:[#allocation2 + $0x1fc] ss:$40 sps:$4 sm:$0xff]   ;;  %v4543_v43 = vld [vmem:[#allocation2 + $0x1f0] ss:$40 sps:$4 sm:$0xff]   ;;  %v4554_v46 = vld [vmem:[#allocation2 + $0x1ac] ss:$40 sps:$4 sm:$0xff]  }
  0x60   :  { %v425_v1 = vunpack.c.l.b16 %v259_v47  ;;  %v426_v35 = vunpack.c.l.b16 %v260_v48  ;;  %v422_v2 = vunpack.c.l.b16 %v256_v49  ;;  %v423_v3 = vunpack.c.l.b16 %v257_v50  ;;  %v4546_v44 = vld [vmem:[#allocation2 + $0x1f8] ss:$40 sps:$4 sm:$0xff]   ;;  %v4551_v45 = vld [vmem:[#allocation2 + $0x1a4] ss:$40 sps:$4 sm:$0xff]   ;;  %v4552_v48 = vld [vmem:[#allocation2 + $0x1a8] ss:$40 sps:$4 sm:$0xff]  }
  0x61   :  { %v427_v4 = vunpack.c.l.b16 %v261_v51  ;;  %v428_v5 = vunpack.c.l.b16 %v262_v52  ;;  %v429_v6 = vunpack.c.l.b16 %v263_v53  ;;  %v431_v7 = vrot.slane %v416_v54, 7  ;;  %v4549_v47 = vld [vmem:[#allocation2 + $0x1a0] ss:$40 sps:$4 sm:$0xff]   ;;  %v4557_v49 = vld [vmem:[#allocation2 + $0x154] ss:$40 sps:$4 sm:$0xff]  }
  0x62   :  { %v434_v8 = vrot.slane %v417_v55, 6  ;;  %v437_v9 = vrot.slane %v418_v56, 5  ;;  %v430_v10 = vunpack.c.l.b16 %v264_v57  ;;  %v440_v11 = vrot.slane %v419_v59, 4  ;;  %v4560_v50 = vld [vmem:[#allocation2 + $0x15c] ss:$40 sps:$4 sm:$0xff]  }
  0x63   :  { %v443_v12 = vrot.slane %v420_v60, 3  ;;  %v452_v13 = vrot.slane %v424_v62, 7  ;;  %v433_v14 = vsel %vm432_vm0, %v431_v7, %v415_v58  ;;  %v454_v15 = vrot.slane %v425_v1, 6  ;;  %v4555_v51 = vld [vmem:[#allocation2 + $0x150] ss:$40 sps:$4 sm:$0xff]  }
  0x64   :  { %v456_v16 = vrot.slane %v426_v35, 5  ;;  %v458_v18 = vrot.slane %v427_v4, 4  ;;  %v436_v19 = vsel %vm435_vm1, %v434_v8, %v433_v14  ;;  %v446_v20 = vrot.slane %v421_v61, 2  ;;  %v4558_v52 = vld [vmem:[#allocation2 + $0x158] ss:$40 sps:$4 sm:$0xff]  }
  0x65   :  { %v453_v21 = vsel %vm432_vm0, %v452_v13, %v423_v3  ;;  %v460_v22 = vrot.slane %v428_v5, 3  ;;  %v439_v23 = vsel %vm438_vm2, %v437_v9, %v436_v19  ;;  %v449_v24 = vrot.slane %v422_v2, 1  ;;  %v4563_v53 = vld [vmem:[#allocation2 + $0x104] ss:$40 sps:$4 sm:$0xff]   ;;  %v4561_v55 = vld [vmem:[#allocation2 + $0x100] ss:$40 sps:$4 sm:$0xff]  }
  0x66   :  { %v455_v25 = vsel %vm435_vm1, %v454_v15, %v453_v21  ;;  %v462_v26 = vrot.slane %v429_v6, 2  ;;  %v442_v27 = vsel %vm441_vm3, %v440_v11, %v439_v23  ;;  %v464_v30 = vrot.slane %v430_v10, 1  ;;  %v4566_v54 = vld [vmem:[#allocation2 + $0x10c] ss:$40 sps:$4 sm:$0xff]   ;;  %v4564_v56 = vld [vmem:[#allocation2 + $0x108] ss:$40 sps:$4 sm:$0xff]  }
  0x67   :  { %v457_v28 = vsel %vm438_vm2, %v456_v16, %v455_v25  ;;  %v445_v31 = vsel %vm444_vm4, %v443_v12, %v442_v27  ;;  %v4569_v57 = vld [vmem:[#allocation2 + $0xb4] ss:$40 sps:$4 sm:$0xff]   ;;  %v4567_v59 = vld [vmem:[#allocation2 + $0xb0] ss:$40 sps:$4 sm:$0xff]   ;;  %v4575_v61 = vld [vmem:[#allocation2 + $0x64] ss:$40 sps:$4 sm:$0xff]  }
  0x68   :  { %v459_v32 = vsel %vm441_vm3, %v458_v18, %v457_v28  ;;  %v448_v34 = vsel %vm447_vm5, %v446_v20, %v445_v31  ;;  %v4572_v58 = vld [vmem:[#allocation2 + $0xbc] ss:$40 sps:$4 sm:$0xff]   ;;  %v4570_v60 = vld [vmem:[#allocation2 + $0xb8] ss:$40 sps:$4 sm:$0xff]   ;;  %v4578_v62 = vld [vmem:[#allocation2 + $0x6c] ss:$40 sps:$4 sm:$0xff]  }
  0x69   :  { %v461_v36 = vsel %vm444_vm4, %v460_v22, %v459_v32  ;;  %v451_v37 = vsel %vm450_vm6, %v449_v24, %v448_v34  ;;  %v4573_v1 = vld [vmem:[#allocation2 + $0x60] ss:$40 sps:$4 sm:$0xff]   ;;  %v4581_v2 = vld [vmem:[#allocation2 + $0x14] ss:$40 sps:$4 sm:$0xff]   ;;  %v4579_v4 = vld [vmem:[#allocation2 + $0x10] ss:$40 sps:$4 sm:$0xff]  }
  0x6a   :  { %v463_v38 = vsel %vm447_vm5, %v462_v26, %v461_v36  ;;  %v4576_v35 = vld [vmem:[#allocation2 + $0x68] ss:$40 sps:$4 sm:$0xff]   ;;  %v4584_v3 = vld [vmem:[#allocation2 + $0x1c] ss:$40 sps:$4 sm:$0xff]   ;;  %v4582_v5 = vld [vmem:[#allocation2 + $0x18] ss:$40 sps:$4 sm:$0xff]  }
  0x6b   :  { %v465_v41 = vsel %vm450_vm6, %v464_v30, %v463_v38  ;;  %v4587_v6 = vld [vmem:[#allocation2 + $0x254] ss:$40 sps:$4 sm:$0xff]   ;;  %v4585_v8 = vld [vmem:[#allocation2 + $0x250] ss:$40 sps:$4 sm:$0xff]   ;;  %v4590_v9 = vld [vmem:[#allocation2 + $0x204] ss:$40 sps:$4 sm:$0xff]  }
  0x6c   :  { %v5438_v42 = vpack.c.b16 %v465_v41, %v451_v37  ;;  %v4611_v7 = vld [vmem:[%s6611_s4 + $0xe4] ss:$16 sps:$4 sm:$0xff]   ;;  %v4609_v10 = vld [vmem:[%s6611_s4 + $0xe0] ss:$16 sps:$4 sm:$0xff]  }
  0x6d   :  { %v4617_v11 = vld [vmem:[%s6611_s4 + $0xc4] ss:$16 sps:$4 sm:$0xff]   ;;  %v4588_v12 = vld [vmem:[#allocation2 + $0x200] ss:$40 sps:$4 sm:$0xff]   ;;  %v4591_v16 = vld [vmem:[#allocation2 + $0x1b0] ss:$40 sps:$4 sm:$0xff]  }
  0x6e   :  { %901 = vmatmul.mubr.bf16.vlgmr.msra.gmra.mxu0 %v5438_v42  ;;  %944 = vmatmul.mubr.bf16.vlgmr.msra.gmra.mxu1 %v5438_v42  ;;  %v4593_v13 = vld [vmem:[#allocation2 + $0x1b4] ss:$40 sps:$4 sm:$0xff]   ;;  %v4615_v14 = vld [vmem:[%s6611_s4 + $0xc0] ss:$16 sps:$4 sm:$0xff]   ;;  %v4596_v18 = vld [vmem:[#allocation2 + $0x164] ss:$40 sps:$4 sm:$0xff]  }
  0x6f   :  { %955 = vmatpush1.bf16.msra.mxu0 %v4537_v29  ;;  %998 = vmatpush1.bf16.msra.mxu1 %v4540_v33  ;;  %v4623_v15 = vld [vmem:[%s6611_s4 + $0xa4] ss:$16 sps:$4 sm:$0xff]   ;;  %v4621_v19 = vld [vmem:[%s6611_s4 + $0xa0] ss:$16 sps:$4 sm:$0xff]  }
  0x70   :  { %956 = vmatprep.subr.bf16.mxu0 %v4545_v39  ;;  %999 = vmatprep.subr.bf16.mxu1 %v4548_v40  ;;  %v4629_v20 = vld [vmem:[%s6611_s4 + $0x84] ss:$16 sps:$4 sm:$0xff]   ;;  %v4627_v22 = vld [vmem:[%s6611_s4 + $0x80] ss:$16 sps:$4 sm:$0xff]  }
  0x71   :  { %986 = vmatprep.mubr.bf16.mxu0 %v5263_v0  ;;  %1029 = vmatprep.mubr.bf16.mxu1 %v5263_v0  ;;  %v4599_v21 = vld [vmem:[#allocation2 + $0x114] ss:$40 sps:$4 sm:$0xff]   ;;  %v4597_v24 = vld [vmem:[#allocation2 + $0x110] ss:$40 sps:$4 sm:$0xff]   ;;  %v4602_v25 = vld [vmem:[#allocation2 + $0xc4] ss:$40 sps:$4 sm:$0xff]  }
  0x72   :  { %v4635_v23 = vld [vmem:[%s6611_s4 + $0x64] ss:$16 sps:$4 sm:$0xff]   ;;  %v4633_v26 = vld [vmem:[%s6611_s4 + $0x60] ss:$16 sps:$4 sm:$0xff]  }
  0x73   :  { %957 = vmatpush1.bf16.msra.mxu0 %v4543_v43  ;;  %1000 = vmatpush1.bf16.msra.mxu1 %v4546_v44  ;;  %v4600_v27 = vld [vmem:[#allocation2 + $0xc0] ss:$40 sps:$4 sm:$0xff]   ;;  %v4605_v28 = vld [vmem:[#allocation2 + $0x74] ss:$40 sps:$4 sm:$0xff]   ;;  %v4603_v30 = vld [vmem:[#allocation2 + $0x70] ss:$40 sps:$4 sm:$0xff]  }
  0x74   :  { %958 = vmatprep.subr.bf16.mxu0 %v4551_v45  ;;  %1001 = vmatprep.subr.bf16.mxu1 %v4554_v46  ;;  %v4608_v31 = vld [vmem:[#allocation2 + $0x24] ss:$40 sps:$4 sm:$0xff]   ;;  %v4606_v32 = vld [vmem:[#allocation2 + $0x20] ss:$40 sps:$4 sm:$0xff]  }
  0x75   :  { %v4614_v29 = vld [vmem:[%s6611_s4 + $0x2e4] ss:$16 sps:$4 sm:$0xff]   ;;  %v4612_v33 = vld [vmem:[%s6611_s4 + $0x2e0] ss:$16 sps:$4 sm:$0xff]  }
  0x76   :  { %v4620_v34 = vld [vmem:[%s6611_s4 + $0x2c4] ss:$16 sps:$4 sm:$0xff]   ;;  %v4618_v36 = vld [vmem:[%s6611_s4 + $0x2c0] ss:$16 sps:$4 sm:$0xff]  }
  0x77   :  { %959 = vmatpush1.bf16.msra.mxu0 %v4549_v47  ;;  %1002 = vmatpush1.bf16.msra.mxu1 %v4552_v48  ;;  %v4641_v37 = vld [vmem:[%s6611_s4 + $0x44] ss:$16 sps:$4 sm:$0xff]   ;;  %v4639_v39 = vld [vmem:[%s6611_s4 + $0x40] ss:$16 sps:$4 sm:$0xff]  }
  0x78   :  { %960 = vmatprep.subr.bf16.mxu0 %v4557_v49  ;;  %1003 = vmatprep.subr.bf16.mxu1 %v4560_v50  ;;  %v4626_v38 = vld [vmem:[%s6611_s4 + $0x2a4] ss:$16 sps:$4 sm:$0xff]   ;;  %v4624_v40 = vld [vmem:[%s6611_s4 + $0x2a0] ss:$16 sps:$4 sm:$0xff]  }
  0x79   :  { %v4647_v41 = vld [vmem:[%s6611_s4 + $0x24] ss:$16 sps:$4 sm:$0xff]   ;;  %v4645_v43 = vld [vmem:[%s6611_s4 + $0x20] ss:$16 sps:$4 sm:$0xff]  }
  0x7a   :  { %v4630_v44 = vld [vmem:[%s6611_s4 + $0x280] ss:$16 sps:$4 sm:$0xff]   ;;  %v4653_v45 = vld [vmem:[%s6611_s4 + $0x4] ss:$16 sps:$4 sm:$0xff]  }
  0x7b   :  { %961 = vmatpush1.bf16.msra.mxu0 %v4555_v51  ;;  %1004 = vmatpush1.bf16.msra.mxu1 %v4558_v52  ;;  %v4638_v46 = vld [vmem:[%s6611_s4 + $0x264] ss:$16 sps:$4 sm:$0xff]   ;;  %v4651_v47 = vld [vmem:[%s6611_s4] ss:$16 sps:$4 sm:$0xff]  }
  0x7c   :  { %962 = vmatprep.subr.bf16.mxu0 %v4563_v53  ;;  %1005 = vmatprep.subr.bf16.mxu1 %v4566_v54  ;;  %v4636_v48 = vld [vmem:[%s6611_s4 + $0x260] ss:$16 sps:$4 sm:$0xff]   ;;  %v4659_v49 = vld [vmem:[%s6611_s4 + $0x1e4] ss:$16 sps:$4 sm:$0xff]  }
  0x7d   :  { %v4644_v50 = vld [vmem:[%s6611_s4 + $0x244] ss:$16 sps:$4 sm:$0xff]   ;;  %v4657_v51 = vld [vmem:[%s6611_s4 + $0x1e0] ss:$16 sps:$4 sm:$0xff]  }
  0x7e   :  { %v4642_v52 = vld [vmem:[%s6611_s4 + $0x240] ss:$16 sps:$4 sm:$0xff]   ;;  %v4665_v53 = vld [vmem:[%s6611_s4 + $0x1c4] ss:$16 sps:$4 sm:$0xff]  }
  0x7f   :  { %963 = vmatpush1.bf16.msra.mxu0 %v4561_v55  ;;  %1006 = vmatpush1.bf16.msra.mxu1 %v4564_v56  ;;  %v4650_v54 = vld [vmem:[%s6611_s4 + $0x224] ss:$16 sps:$4 sm:$0xff]   ;;  %v4663_v55 = vld [vmem:[%s6611_s4 + $0x1c0] ss:$16 sps:$4 sm:$0xff]  }
  0x80   :  { %964 = vmatprep.subr.bf16.mxu0 %v4569_v57  ;;  %1007 = vmatprep.subr.bf16.mxu1 %v4572_v58  ;;  %v4648_v56 = vld [vmem:[%s6611_s4 + $0x220] ss:$16 sps:$4 sm:$0xff]   ;;  %v4671_v57 = vld [vmem:[%s6611_s4 + $0x1a4] ss:$16 sps:$4 sm:$0xff]  }
  0x81   :  { %v4656_v58 = vld [vmem:[%s6611_s4 + $0x204] ss:$16 sps:$4 sm:$0xff]  }
  0x83   :  { %965 = vmatpush1.bf16.msra.mxu0 %v4567_v59  ;;  %1008 = vmatpush1.bf16.msra.mxu1 %v4570_v60  ;;  %v4669_v59 = vld [vmem:[%s6611_s4 + $0x1a0] ss:$16 sps:$4 sm:$0xff]  }
  0x84   :  { %966 = vmatprep.subr.bf16.mxu0 %v4575_v61  ;;  %1009 = vmatprep.subr.bf16.mxu1 %v4578_v62  ;;  %v4654_v60 = vld [vmem:[%s6611_s4 + $0x200] ss:$16 sps:$4 sm:$0xff]   ;;  %v4677_v61 = vld [vmem:[%s6611_s4 + $0x184] ss:$16 sps:$4 sm:$0xff]  }
  0x85   :  { %v4662_v62 = vld [vmem:[%s6611_s4 + $0x3e4] ss:$16 sps:$4 sm:$0xff]  }
  0x87   :  { %967 = vmatpush1.bf16.msra.mxu0 %v4573_v1  ;;  %1010 = vmatpush1.bf16.msra.mxu1 %v4576_v35  ;;  %v4675_v1 = vld [vmem:[%s6611_s4 + $0x180] ss:$16 sps:$4 sm:$0xff]   ;;  %v4683_v35 = vld [vmem:[%s6611_s4 + $0x164] ss:$16 sps:$4 sm:$0xff]  }
  0x88   :  { %968 = vmatprep.subr.bf16.mxu0 %v4581_v2  ;;  %1011 = vmatprep.subr.bf16.mxu1 %v4584_v3  ;;  %v4660_v2 = vld [vmem:[%s6611_s4 + $0x3e0] ss:$16 sps:$4 sm:$0xff]  }
  0x89   :  { %v4681_v3 = vld [vmem:[%s6611_s4 + $0x160] ss:$16 sps:$4 sm:$0xff]  }
  0x8b   :  { %969 = vmatpush1.bf16.msra.mxu0 %v4579_v4  ;;  %1012 = vmatpush1.bf16.msra.mxu1 %v4582_v5  ;;  %v4668_v4 = vld [vmem:[%s6611_s4 + $0x3c4] ss:$16 sps:$4 sm:$0xff]  }
  0x8c   :  { %1040 = vmatprep.subr.bf16.mxu0 %v4587_v6  ;;  %3175 = vmatprep.subr.bf16.mxu1 %v4611_v7  ;;  %v4689_v5 = vld [vmem:[%s6611_s4 + $0x144] ss:$16 sps:$4 sm:$0xff]   ;;  %v4666_v6 = vld [vmem:[%s6611_s4 + $0x3c0] ss:$16 sps:$4 sm:$0xff]  }
  0x8d   :  { %v4687_v7 = vld [vmem:[%s6611_s4 + $0x140] ss:$16 sps:$4 sm:$0xff]  }
  0x8e   :  { %987 = vmatmul.mubr.bf16.vlgmr.msra.gmra.mxu0 %v5438_v42  ;;  %1030 = vmatmul.mubr.bf16.vlgmr.msra.gmra.mxu1 %v5438_v42 }
  0x8f   :  { %1041 = vmatpush1.bf16.msra.mxu0 %v4585_v8  ;;  %1072 = vmatprep.mubr.bf16.mxu0 %v5263_v0  ;;  %v4594_v0 = vld [vmem:[#allocation2 + $0x160] ss:$40 sps:$4 sm:$0xff]   ;;  %v4674_v8 = vld [vmem:[%s6611_s4 + $0x3a4] ss:$16 sps:$4 sm:$0xff]  }
  0x90   :  { %1042 = vmatprep.subr.bf16.mxu0 %v4590_v9  ;;  %3176 = vmatpush1.bf16.msra.mxu1 %v4609_v10  ;;  %v4672_v9 = vld [vmem:[%s6611_s4 + $0x3a0] ss:$16 sps:$4 sm:$0xff]   ;;  %v4695_v10 = vld [vmem:[%s6611_s4 + $0x124] ss:$16 sps:$4 sm:$0xff]  }
  0x91   :  { %3177 = vmatprep.subr.bf16.mxu1 %v4617_v11  ;;  %v4680_v11 = vld [vmem:[%s6611_s4 + $0x384] ss:$16 sps:$4 sm:$0xff]  }
  0x93   :  { %1043 = vmatpush1.bf16.msra.mxu0 %v4588_v12  ;;  %v4693_v12 = vld [vmem:[%s6611_s4 + $0x120] ss:$16 sps:$4 sm:$0xff]  }
  0x94   :  { %1044 = vmatprep.subr.bf16.mxu0 %v4593_v13  ;;  %3178 = vmatpush1.bf16.msra.mxu1 %v4615_v14  ;;  %v4678_v13 = vld [vmem:[%s6611_s4 + $0x380] ss:$16 sps:$4 sm:$0xff]   ;;  %v4701_v14 = vld [vmem:[%s6611_s4 + $0x104] ss:$16 sps:$4 sm:$0xff]  }
  0x95   :  { %3179 = vmatprep.subr.bf16.mxu1 %v4623_v15  ;;  %v4686_v15 = vld [vmem:[%s6611_s4 + $0x364] ss:$16 sps:$4 sm:$0xff]  }
  0x97   :  { %1045 = vmatpush1.bf16.msra.mxu0 %v4591_v16  ;;  %v4699_v16 = vld [vmem:[%s6611_s4 + $0x100] ss:$16 sps:$4 sm:$0xff]  }
  0x98   :  { %1046 = vmatprep.subr.bf16.mxu0 %v4596_v18  ;;  %3180 = vmatpush1.bf16.msra.mxu1 %v4621_v19  ;;  %v4684_v18 = vld [vmem:[%s6611_s4 + $0x360] ss:$16 sps:$4 sm:$0xff]   ;;  %v4707_v19 = vld [vmem:[%s6611_s4 + $0x4e4] ss:$16 sps:$4 sm:$0xff]  }
  0x99   :  { %3181 = vmatprep.subr.bf16.mxu1 %v4629_v20  ;;  %v4692_v20 = vld [vmem:[%s6611_s4 + $0x344] ss:$16 sps:$4 sm:$0xff]  }
  0x9b   :  { %1047 = vmatpush1.bf16.msra.mxu0 %v4594_v0  ;;  %v4690_v0 = vld [vmem:[%s6611_s4 + $0x340] ss:$16 sps:$4 sm:$0xff]  }
  0x9c   :  { %1048 = vmatprep.subr.bf16.mxu0 %v4599_v21  ;;  %3182 = vmatpush1.bf16.msra.mxu1 %v4627_v22  ;;  %v4698_v21 = vld [vmem:[%s6611_s4 + $0x324] ss:$16 sps:$4 sm:$0xff]   ;;  %v4696_v22 = vld [vmem:[%s6611_s4 + $0x320] ss:$16 sps:$4 sm:$0xff]  }
  0x9d   :  { %3183 = vmatprep.subr.bf16.mxu1 %v4635_v23  ;;  %v4704_v23 = vld [vmem:[%s6611_s4 + $0x304] ss:$16 sps:$4 sm:$0xff]  }
  0x9f   :  { %1049 = vmatpush1.bf16.msra.mxu0 %v4597_v24  ;;  %v4702_v24 = vld [vmem:[%s6611_s4 + $0x300] ss:$16 sps:$4 sm:$0xff]  }
  0xa0   :  { %1050 = vmatprep.subr.bf16.mxu0 %v4602_v25  ;;  %3184 = vmatpush1.bf16.msra.mxu1 %v4633_v26  ;;  %v4710_v25 = vld [vmem:[%s6611_s4 + $0x6e4] ss:$16 sps:$4 sm:$0xff]   ;;  %v359_v26 = vsub.s32 2, %v5389_v63 }
  0xa1   :  { %3185 = vmatprep.subr.bf16.mxu1 %v4641_v37 }
  0xa3   :  { %1051 = vmatpush1.bf16.msra.mxu0 %v4600_v27  ;;  %v5650_v27 = vld [vmem:[%s6610_s3] sm:$0xff] }
  0xa4   :  { %1052 = vmatprep.subr.bf16.mxu0 %v4605_v28  ;;  %3186 = vmatpush1.bf16.msra.mxu1 %v4639_v39  ;;  %v5653_v28 = vsub.s32 1, %v5389_v63 }
  0xa5   :  { %3187 = vmatprep.subr.bf16.mxu1 %v4647_v41 }
  0xa7   :  { %1053 = vmatpush1.bf16.msra.mxu0 %v4603_v30  ;;  %v363_v30 = vsub.s32 3, %v5389_v63 }
  0xa8   :  { %1054 = vmatprep.subr.bf16.mxu0 %v4608_v31  ;;  %3188 = vmatpush1.bf16.msra.mxu1 %v4645_v43  ;;  %v352_v31 = vrot.slane %v5650_v27, %v5416_v17 }
  0xa9   :  { %3189 = vmatprep.subr.bf16.mxu1 %v4653_v45 }
  0xab   :  { %1055 = vmatpush1.bf16.msra.mxu0 %v4606_v32  ;;  %v360_v32 = vrot.slane %v5650_v27, %v359_v26 }
  0xac   :  { %3218 = vmatprep.subr.bf16.mxu0 %v4614_v29  ;;  %3190 = vmatpush1.bf16.msra.mxu1 %v4651_v47  ;;  %v356_v29 = vrot.slane %v5650_v27, %v5653_v28 }
  0xad   :  { %3191 = vmatprep.subr.bf16.mxu1 %v4659_v49 }
  0xae   :  { %1073 = vmatmul.mubr.bf16.vlgmr.msra.gmra.mxu0 %v5438_v42  ;;  %v4632_v42 = vld [vmem:[%s6611_s4 + $0x284] ss:$16 sps:$4 sm:$0xff]  }
  0xaf   :  { %3219 = vmatpush1.bf16.msra.mxu0 %v4612_v33  ;;  %v364_v33 = vrot.slane %v5650_v27, %v363_v30 }
  0xb0   :  { %3220 = vmatprep.subr.bf16.mxu0 %v4620_v34  ;;  %3192 = vmatpush2.bf16.msra.mxu1 %v4657_v51 }
  0xb1   :  { %3193 = vmatprep.subr.bf16.mxu1 %v4665_v53 }
  0xb3   :  { %3221 = vmatpush1.bf16.msra.mxu0 %v4618_v36 }
  0xb4   :  { %3222 = vmatprep.subr.bf16.mxu0 %v4626_v38  ;;  %3194 = vmatpush2.bf16.msra.mxu1 %v4663_v55 }
  0xb5   :  { %3195 = vmatprep.subr.bf16.mxu1 %v4671_v57 }
  0xb7   :  { %3223 = vmatpush1.bf16.msra.mxu0 %v4624_v40 }
  0xb8   :  { %3224 = vmatprep.subr.bf16.mxu0 %v4632_v42  ;;  %3196 = vmatpush2.bf16.msra.mxu1 %v4669_v59 }
  0xb9   :  { %3197 = vmatprep.subr.bf16.mxu1 %v4677_v61 }
  0xbb   :  { %3225 = vmatpush1.bf16.msra.mxu0 %v4630_v44 }
  0xbc   :  { %3226 = vmatprep.subr.bf16.mxu0 %v4638_v46  ;;  %3198 = vmatpush2.bf16.msra.mxu1 %v4675_v1 }
  0xbd   :  { %3199 = vmatprep.subr.bf16.mxu1 %v4683_v35 }
  0xbf   :  { %3227 = vmatpush1.bf16.msra.mxu0 %v4636_v48 }
  0xc0   :  { %3228 = vmatprep.subr.bf16.mxu0 %v4644_v50  ;;  %3200 = vmatpush2.bf16.msra.mxu1 %v4681_v3 }
  0xc1   :  { %3201 = vmatprep.subr.bf16.mxu1 %v4689_v5 }
  0xc3   :  { %3229 = vmatpush1.bf16.msra.mxu0 %v4642_v52 }
  0xc4   :  { %3230 = vmatprep.subr.bf16.mxu0 %v4650_v54  ;;  %3202 = vmatpush2.bf16.msra.mxu1 %v4687_v7 }
  0xc5   :  { %3203 = vmatprep.subr.bf16.mxu1 %v4695_v10 }
  0xc7   :  { %3231 = vmatpush1.bf16.msra.mxu0 %v4648_v56 }
  0xc8   :  { %3232 = vmatprep.subr.bf16.mxu0 %v4656_v58  ;;  %3204 = vmatpush2.bf16.msra.mxu1 %v4693_v12  ;;  %v371_v12 = vsub.s32 5, %v5389_v63 }
  0xc9   :  { %3205 = vmatprep.subr.bf16.mxu1 %v4701_v14 }
  0xca   :  { %v372_v14 = vrot.slane %v5650_v27, %v371_v12 }
  0xcb   :  { %3233 = vmatpush1.bf16.msra.mxu0 %v4654_v60 }
  0xcc   :  { %3234 = vmatprep.subr.bf16.mxu0 %v4662_v62  ;;  %3206 = vmatpush2.bf16.msra.mxu1 %v4699_v16 }
  0xcd   :  { %3261 = vmatprep.subr.bf16.mxu1 %v4707_v19 }
  0xcf   :  { %3235 = vmatpush2.bf16.msra.mxu0 %v4660_v2 }
  0xd0   :  { %3236 = vmatprep.subr.bf16.mxu0 %v4668_v4 }
  0xd3   :  { %3237 = vmatpush2.bf16.msra.mxu0 %v4666_v6 }
  0xd4   :  { %3238 = vmatprep.subr.bf16.mxu0 %v4674_v8 }
  0xd7   :  { %3239 = vmatpush2.bf16.msra.mxu0 %v4672_v9 }
  0xd8   :  { %3240 = vmatprep.subr.bf16.mxu0 %v4680_v11 }
  0xdb   :  { %3241 = vmatpush2.bf16.msra.mxu0 %v4678_v13  ;;  %v379_v13 = vsub.s32 7, %v5389_v63 }
  0xdc   :  { %3242 = vmatprep.subr.bf16.mxu0 %v4686_v15 }
  0xdf   :  { %3243 = vmatpush2.bf16.msra.mxu0 %v4684_v18  ;;  %v380_v18 = vrot.slane %v5650_v27, %v379_v13 }
  0xe0   :  { %3244 = vmatprep.subr.bf16.mxu0 %v4692_v20 }
  0xe3   :  { %3245 = vmatpush2.bf16.msra.mxu0 %v4690_v0 }
  0xe4   :  { %3246 = vmatprep.subr.bf16.mxu0 %v4698_v21 }
  0xe7   :  { %3247 = vmatpush2.bf16.msra.mxu0 %v4696_v22 }
  0xe8   :  { %3248 = vmatprep.subr.bf16.mxu0 %v4704_v23 }
  0xeb   :  { %3249 = vmatpush2.bf16.msra.mxu0 %v4702_v24 }
  0xec   :  { %3304 = vmatprep.subr.bf16.mxu0 %v4710_v25 }
 0x12e   :  { %v902_v34 = vpop.f32.mrf.mxu0  ;;  %v945_v36 = vpop.f32.mrf.mxu1 }
 0x12f   :  { %v5666_v37 = vadd.f32 %v902_v34, %v352_v31  ;;  %v5668_v38 = vadd.f32 %v945_v36, %v360_v32 }
 0x130   :  { %v904_v39 = vpop.f32.mrf.mxu0  ;;  %v947_v40 = vpop.f32.mrf.mxu1 }
 0x131   :  { %v4063_v41 = vmul.f32 -1.442695, %v5666_v37  ;;  %v4065_v42 = vmul.f32 -1.442695, %v5668_v38  ;;  %v5672_v43 = vadd.f32 %v904_v39, %v356_v29  ;;  %v5674_v44 = vadd.f32 %v947_v40, %v364_v33 }
 0x132   :  { %v906_v45 = vpop.f32.mrf.mxu0  ;;  %v949_v46 = vpop.f32.mrf.mxu1 }
 0x133   :  { %5125 = vpow2.f32 %v4063_v41  ;;  %v4064_v47 = vmul.f32 -1.442695, %v5672_v43  ;;  %v4066_v48 = vmul.f32 -1.442695, %v5674_v44  ;;  %v5678_v49 = vadd.f32 %v906_v45, %v352_v31 }
 0x134   :  { %5127 = vpow2.f32 %v4065_v42  ;;  %v5680_v50 = vadd.f32 %v949_v46, %v360_v32  ;;  %v908_v51 = vpop.f32.mrf.mxu0  ;;  %v951_v52 = vpop.f32.mrf.mxu1 }
 0x135   :  { %5129 = vpow2.f32 %v4064_v47  ;;  %v4073_v53 = vmul.f32 -1.442695, %v5678_v49  ;;  %v5683_v54 = vadd.f32 %v908_v51, %v356_v29  ;;  %v5685_v55 = vadd.f32 %v951_v52, %v364_v33 }
 0x136   :  { %5131 = vpow2.f32 %v4066_v48  ;;  %v4075_v56 = vmul.f32 -1.442695, %v5680_v50 }
 0x137   :  { %5133 = vpow2.f32 %v4073_v53  ;;  %v4074_v57 = vmul.f32 -1.442695, %v5683_v54  ;;  %v4076_v58 = vmul.f32 -1.442695, %v5685_v55 }
 0x138   :  { %5135 = vpow2.f32 %v4075_v56 }
 0x139   :  { %5137 = vpow2.f32 %v4074_v57 }
 0x13a   :  { %5139 = vpow2.f32 %v4076_v58 }
 0x140   :  { %v5126_v59 = vpop.eup %5125 }
 0x141   :  { %v5128_v60 = vpop.eup %5127  ;;  %v1143_v61 = vadd.f32 1.0, %v5126_v59 }
 0x142   :  { %v5130_v62 = vpop.eup %5129  ;;  %v1145_v1 = vadd.f32 1.0, %v5128_v60 }
 0x143   :  { %v5132_v35 = vpop.eup %5131  ;;  %5141 = vrcp.f32 %v1143_v61  ;;  %v1144_v2 = vadd.f32 1.0, %v5130_v62  ;;  %v4711_v61 = vld [vmem:[%s6611_s4 + $0x4c0] ss:$16 sps:$4 sm:$0xff]  }
 0x144   :  { %v5134_v3 = vpop.eup %5133  ;;  %5143 = vrcp.f32 %v1145_v1  ;;  %v1146_v4 = vadd.f32 1.0, %v5132_v35  ;;  %v4714_v62 = vld [vmem:[%s6611_s4 + $0x6c0] ss:$16 sps:$4 sm:$0xff]   ;;  %v4719_v1 = vld [vmem:[%s6611_s4 + $0x4a4] ss:$16 sps:$4 sm:$0xff]  }
 0x145   :  { %v5136_v5 = vpop.eup %5135  ;;  %5145 = vrcp.f32 %v1144_v2  ;;  %v1153_v6 = vadd.f32 1.0, %v5134_v3  ;;  %v4722_v35 = vld [vmem:[%s6611_s4 + $0x6a4] ss:$16 sps:$4 sm:$0xff]   ;;  %v367_v2 = vsub.s32 4, %v5389_v63  ;;  %v375_v3 = vsub.s32 6, %v5389_v63 }
 0x146   :  { %v5138_v7 = vpop.eup %5137  ;;  %5147 = vrcp.f32 %v1146_v4  ;;  %v1155_v8 = vadd.f32 1.0, %v5136_v5  ;;  %v4717_v4 = vld [vmem:[%s6611_s4 + $0x4a0] ss:$16 sps:$4 sm:$0xff]  }
 0x147   :  { %v5140_v9 = vpop.eup %5139  ;;  %5149 = vrcp.f32 %v1153_v6  ;;  %v1154_v10 = vadd.f32 1.0, %v5138_v7  ;;  %v4720_v6 = vld [vmem:[%s6611_s4 + $0x6a0] ss:$16 sps:$4 sm:$0xff]   ;;  %v4725_v7 = vld [vmem:[%s6611_s4 + $0x484] ss:$16 sps:$4 sm:$0xff]   ;;  %v376_v13 = vrot.slane %v5650_v27, %v375_v3 }
 0x148   :  { %5151 = vrcp.f32 %v1155_v8  ;;  %v1156_v11 = vadd.f32 1.0, %v5140_v9 }
 0x149   :  { %5153 = vrcp.f32 %v1154_v10  ;;  %v4728_v10 = vld [vmem:[%s6611_s4 + $0x684] ss:$16 sps:$4 sm:$0xff]  }
 0x14a   :  { %5155 = vrcp.f32 %v1156_v11  ;;  %v368_v11 = vrot.slane %v5650_v27, %v367_v2  ;;  %v4734_v27 = vld [vmem:[%s6611_s4 + $0x664] ss:$16 sps:$4 sm:$0xff]  }
 0x14e   :  { %v5693_v15 = vpop.f32.mrf.mxu0  ;;  %v5695_v16 = vpop.f32.mrf.mxu1 }
 0x150   :  { %v5142_v19 = vpop.eup %5141  ;;  %v990_v20 = vpop.f32.mrf.mxu0 }
 0x151   :  { %v1033_v0 = vpop.f32.mrf.mxu1  ;;  %v5144_v21 = vpop.eup %5143  ;;  %v5698_v22 = vadd.f32 %v990_v20, %v372_v14  ;;  %v1203_v56 = vmul.f32 %v5142_v19, %v5666_v37  ;;  %v4708_v37 = vld [vmem:[%s6611_s4 + $0x6e0] ss:$16 sps:$4 sm:$0xff]   ;;  %v4731_v20 = vld [vmem:[%s6611_s4 + $0x464] ss:$16 sps:$4 sm:$0xff]  }
 0x152   :  { %v5146_v23 = vpop.eup %5145  ;;  %v5700_v24 = vadd.f32 %v1033_v0, %v380_v18  ;;  %v5702_v25 = vpop.f32.mrf.mxu0  ;;  %v1205_v59 = vmul.f32 %v5144_v21, %v5668_v38  ;;  %v4713_v38 = vld [vmem:[%s6611_s4 + $0x4c4] ss:$16 sps:$4 sm:$0xff]   ;;  %v4726_v19 = vld [vmem:[%s6611_s4 + $0x680] ss:$16 sps:$4 sm:$0xff]  }
 0x153   :  { %v5704_v31 = vpop.f32.mrf.mxu1  ;;  %v5148_v32 = vpop.eup %5147  ;;  %v4068_v29 = vmul.f32 -1.442695, %v5698_v22  ;;  %v1204_v48 = vmul.f32 %v5146_v23, %v5672_v43  ;;  %v4705_v43 = vld [vmem:[%s6611_s4 + $0x4e0] ss:$16 sps:$4 sm:$0xff]   ;;  %v5787_v23 = vadd.f32 %v5693_v15, %v368_v11 }
 0x154   :  { %v5150_v33 = vpop.eup %5149  ;;  %v4070_v34 = vmul.f32 -1.442695, %v5700_v24  ;;  %v994_v36 = vpop.f32.mrf.mxu0  ;;  %v1206_v57 = vmul.f32 %v5148_v32, %v5674_v44  ;;  %v4732_v15 = vld [vmem:[%s6611_s4 + $0x660] ss:$16 sps:$4 sm:$0xff]  }
 0x155   :  { %v1037_v39 = vpop.f32.mrf.mxu1  ;;  %v5152_v40 = vpop.eup %5151  ;;  %5157 = vpow2.f32 %v4068_v29  ;;  %v5708_v41 = vadd.f32 %v994_v36, %v372_v14  ;;  %v1213_v45 = vmul.f32 %v5150_v33, %v5678_v49  ;;  %v4723_v14 = vld [vmem:[%s6611_s4 + $0x480] ss:$16 sps:$4 sm:$0xff]   ;;  %v5790_v29 = vadd.f32 %v5695_v16, %v376_v13  ;;  %v4737_v16 = vld [vmem:[%s6611_s4 + $0x444] ss:$16 sps:$4 sm:$0xff]   ;;  %v5807_v36 = vld [vmem:[%s6610_s3 + $0x8] sm:$0x3] }
 0x156   :  { %v5154_v42 = vpop.eup %5153  ;;  %5159 = vpow2.f32 %v4070_v34  ;;  %v5711_v46 = vadd.f32 %v1037_v39, %v380_v18  ;;  %v1215_v51 = vmul.f32 %v5152_v40, %v5680_v50  ;;  %v4729_v33 = vld [vmem:[%s6611_s4 + $0x460] ss:$16 sps:$4 sm:$0xff]   ;;  %v5796_v34 = vadd.f32 %v5702_v25, %v368_v11  ;;  %v4740_v25 = vld [vmem:[%s6611_s4 + $0x644] ss:$16 sps:$4 sm:$0xff]  }
 0x157   :  { %v5156_v47 = vpop.eup %5155  ;;  %v1214_v52 = vmul.f32 %v5154_v42, %v5683_v54  ;;  %v4078_v53 = vmul.f32 -1.442695, %v5708_v41  ;;  %v5727_v50 = vpack.c.bf16 %v1213_v45, %v1203_v56  ;;  %v5810_v39 = vadd.f32 %v5704_v31, %v376_v13  ;;  %v4735_v45 = vld [vmem:[%s6611_s4 + $0x440] ss:$16 sps:$4 sm:$0xff]   ;;  %v4746_v56 = vld [vmem:[%s6611_s4 + $0x624] ss:$16 sps:$4 sm:$0xff]  }
 0x158   :  { %v1216_v58 = vmul.f32 %v5156_v47, %v5685_v55  ;;  %v4080_v49 = vmul.f32 -1.442695, %v5711_v46  ;;  %v5737_v44 = vpack.c.bf16 %v1215_v51, %v1205_v59  ;;  %v4716_v55 = vld [vmem:[%s6611_s4 + $0x6c4] ss:$16 sps:$4 sm:$0xff]   ;;  %v4067_v40 = vmul.f32 -1.442695, %v5787_v23 }
 0x159   :  { %5161 = vpow2.f32 %v4078_v53  ;;  %v5722_v60 = vpack.c.bf16 %v1214_v52, %v1204_v48  ;;  %v4069_v42 = vmul.f32 -1.442695, %v5790_v29  ;;  %v388_v47 = vrot.slane %v5807_v36, %v5653_v28  ;;  %v4738_v48 = vld [vmem:[%s6611_s4 + $0x640] ss:$16 sps:$4 sm:$0xff]   ;;  %v4743_v51 = vld [vmem:[%s6611_s4 + $0x424] ss:$16 sps:$4 sm:$0xff]  }
 0x15a   :  { %5163 = vpow2.f32 %v4080_v49  ;;  %v5729_v54 = vpack.c.bf16 %v1216_v58, %v1206_v57  ;;  %v4077_v31 = vmul.f32 -1.442695, %v5796_v34  ;;  %v4079_v53 = vmul.f32 -1.442695, %v5810_v39  ;;  %v4741_v58 = vld [vmem:[%s6611_s4 + $0x420] ss:$16 sps:$4 sm:$0xff]  }
 0x15b   :  { %3207 = vmatprep.mubr.bf16.mxu1 %v5722_v60  ;;  %v4744_v59 = vld [vmem:[%s6611_s4 + $0x620] ss:$16 sps:$4 sm:$0xff]  }
 0x15c   :  { %3250 = vmatprep.mubr.bf16.mxu0 %v5729_v54  ;;  %3208 = vmatmul.mubr.bf16.vlgmr.msra.gmra.mxu1 %v5727_v50 }
 0x15d   :  { %3251 = vmatmul.mubr.bf16.vlgmr.msra.gmra.mxu0 %v5737_v44  ;;  %3262 = vmatpush1.bf16.msra.mxu1 %v4705_v43  ;;  %v4749_v43 = vld [vmem:[%s6611_s4 + $0x404] ss:$16 sps:$4 sm:$0xff]  }
 0x15e   :  { %3305 = vmatpush1.bf16.msra.mxu0 %v4708_v37  ;;  %3263 = vmatprep.subr.bf16.mxu1 %v4713_v38  ;;  %v4752_v38 = vld [vmem:[%s6611_s4 + $0x604] ss:$16 sps:$4 sm:$0xff]  }
 0x15f   :  { %3306 = vmatprep.subr.bf16.mxu0 %v4716_v55 }
 0x161   :  { %3264 = vmatpush1.bf16.msra.mxu1 %v4711_v61 }
 0x162   :  { %v5158_v5 = vpop.eup %5157  ;;  %3307 = vmatpush1.bf16.msra.mxu0 %v4714_v62  ;;  %3265 = vmatprep.subr.bf16.mxu1 %v4719_v1 }
 0x163   :  { %v5160_v8 = vpop.eup %5159  ;;  %v1148_v9 = vadd.f32 1.0, %v5158_v5  ;;  %3308 = vmatprep.subr.bf16.mxu0 %v4722_v35  ;;  %v4747_v35 = vld [vmem:[%s6611_s4 + $0x400] ss:$16 sps:$4 sm:$0xff]   ;;  %v4755_v5 = vld [vmem:[%s6611_s4 + $0x5e4] ss:$16 sps:$4 sm:$0xff]  }
 0x164   :  { %v1150_v12 = vadd.f32 1.0, %v5160_v8 }
 0x165   :  { %3266 = vmatpush1.bf16.msra.mxu1 %v4717_v4  ;;  %5165 = vrcp.f32 %v1148_v9  ;;  %v4750_v4 = vld [vmem:[%s6611_s4 + $0x600] ss:$16 sps:$4 sm:$0xff]   ;;  %v4758_v9 = vld [vmem:[%s6611_s4 + $0x7e4] ss:$16 sps:$4 sm:$0xff]  }
 0x166   :  { %v5162_v18 = vpop.eup %5161  ;;  %3309 = vmatpush1.bf16.msra.mxu0 %v4720_v6  ;;  %3267 = vmatprep.subr.bf16.mxu1 %v4725_v7  ;;  %5167 = vrcp.f32 %v1150_v12 }
 0x167   :  { %v5164_v0 = vpop.eup %5163  ;;  %v1158_v21 = vadd.f32 1.0, %v5162_v18  ;;  %3310 = vmatprep.subr.bf16.mxu0 %v4728_v10 }
 0x168   :  { %v1160_v32 = vadd.f32 1.0, %v5164_v0  ;;  %v4762_v0 = vld [vmem:[%s6611_s4 + $0x7c0] ss:$16 sps:$4 sm:$0xff]  }
 0x169   :  { %5169 = vrcp.f32 %v1158_v21  ;;  %3268 = vmatpush1.bf16.msra.mxu1 %v4723_v14  ;;  %v4756_v14 = vld [vmem:[%s6611_s4 + $0x7e0] ss:$16 sps:$4 sm:$0xff]   ;;  %v4767_v21 = vld [vmem:[%s6611_s4 + $0x5a4] ss:$16 sps:$4 sm:$0xff]  }
 0x16a   :  { %5171 = vrcp.f32 %v1160_v32  ;;  %3311 = vmatpush1.bf16.msra.mxu0 %v4726_v19  ;;  %3269 = vmatprep.subr.bf16.mxu1 %v4731_v20  ;;  %v4759_v19 = vld [vmem:[%s6611_s4 + $0x5c0] ss:$16 sps:$4 sm:$0xff]   ;;  %v4770_v32 = vld [vmem:[%s6611_s4 + $0x7a4] ss:$16 sps:$4 sm:$0xff]  }
 0x16b   :  { %3312 = vmatprep.subr.bf16.mxu0 %v4734_v27  ;;  %5173 = vpow2.f32 %v4067_v40 }
 0x16c   :  { %5175 = vpow2.f32 %v4069_v42 }
 0x16d   :  { %3270 = vmatpush1.bf16.msra.mxu1 %v4729_v33  ;;  %5177 = vpow2.f32 %v4077_v31 }
 0x16e   :  { %3313 = vmatpush1.bf16.msra.mxu0 %v4732_v15  ;;  %3271 = vmatprep.subr.bf16.mxu1 %v4737_v16  ;;  %v5829_v52 = vpop.f32.mrf.mxu0  ;;  %5179 = vpow2.f32 %v4079_v53  ;;  %v4771_v53 = vld [vmem:[%s6611_s4 + $0x580] ss:$16 sps:$4 sm:$0xff]  }
 0x16f   :  { %3314 = vmatprep.subr.bf16.mxu0 %v4740_v25  ;;  %v4765_v25 = vld [vmem:[%s6611_s4 + $0x5a0] ss:$16 sps:$4 sm:$0xff]  }
 0x170   :  { %v1076_v57 = vpop.f32.mrf.mxu0 }
 0x171   :  { %3272 = vmatpush1.bf16.msra.mxu1 %v4735_v45  ;;  %v5838_v49 = vadd.f32 %v1076_v57, %v388_v47  ;;  %v4768_v45 = vld [vmem:[%s6611_s4 + $0x7a0] ss:$16 sps:$4 sm:$0xff]  }
 0x172   :  { %3315 = vmatpush1.bf16.msra.mxu0 %v4738_v48  ;;  %3273 = vmatprep.subr.bf16.mxu1 %v4743_v51  ;;  %v5846_v37 = vpop.f32.mrf.mxu0  ;;  %v5166_v61 = vpop.eup %5165  ;;  %v4776_v48 = vld [vmem:[%s6611_s4 + $0x784] ss:$16 sps:$4 sm:$0xff]   ;;  %v4774_v57 = vld [vmem:[%s6611_s4 + $0x780] ss:$16 sps:$4 sm:$0xff]  }
 0x173   :  { %3316 = vmatprep.subr.bf16.mxu0 %v4746_v56  ;;  %v4072_v55 = vmul.f32 -1.442695, %v5838_v49  ;;  %v5168_v1 = vpop.eup %5167  ;;  %v1208_v7 = vmul.f32 %v5166_v61, %v5698_v22  ;;  %v4753_v22 = vld [vmem:[%s6611_s4 + $0x5e0] ss:$16 sps:$4 sm:$0xff]   ;;  %v4785_v61 = vld [vmem:[%s6611_s4 + $0x544] ss:$16 sps:$4 sm:$0xff]  }
 0x174   :  { %v1080_v62 = vpop.f32.mrf.mxu0  ;;  %v1210_v11 = vmul.f32 %v5168_v1, %v5700_v24  ;;  %v4761_v24 = vld [vmem:[%s6611_s4 + $0x5c4] ss:$16 sps:$4 sm:$0xff]   ;;  %v4783_v1 = vld [vmem:[%s6611_s4 + $0x540] ss:$16 sps:$4 sm:$0xff]  }
 0x175   :  { %3274 = vmatpush1.bf16.msra.mxu1 %v4741_v58  ;;  %5181 = vpow2.f32 %v4072_v55  ;;  %v5855_v2 = vadd.f32 %v1080_v62, %v388_v47  ;;  %v4773_v47 = vld [vmem:[%s6611_s4 + $0x584] ss:$16 sps:$4 sm:$0xff]   ;;  %v4780_v55 = vld [vmem:[%s6611_s4 + $0x760] ss:$16 sps:$4 sm:$0xff]  }
 0x176   :  { %v5170_v3 = vpop.eup %5169  ;;  %3317 = vmatpush1.bf16.msra.mxu0 %v4744_v59  ;;  %3275 = vmatprep.subr.bf16.mxu1 %v4749_v43  ;;  %v4779_v58 = vld [vmem:[%s6611_s4 + $0x564] ss:$16 sps:$4 sm:$0xff]  }
 0x177   :  { %v5172_v6 = vpop.eup %5171  ;;  %v1218_v8 = vmul.f32 %v5170_v3, %v5708_v41  ;;  %3318 = vmatprep.subr.bf16.mxu0 %v4752_v38  ;;  %v4082_v10 = vmul.f32 -1.442695, %v5855_v2  ;;  %v4782_v59 = vld [vmem:[%s6611_s4 + $0x764] ss:$16 sps:$4 sm:$0xff]   ;;  %v4777_v38 = vld [vmem:[%s6611_s4 + $0x560] ss:$16 sps:$4 sm:$0xff]  }
 0x178   :  { %v1220_v12 = vmul.f32 %v5172_v6, %v5711_v46  ;;  %v4764_v46 = vld [vmem:[%s6611_s4 + $0x7c4] ss:$16 sps:$4 sm:$0xff]   ;;  %v5174_v18 = vpop.eup %5173  ;;  %v4789_v6 = vld [vmem:[%s6611_s4 + $0x520] ss:$16 sps:$4 sm:$0xff]  }
 0x179   :  { %3276 = vmatpush1.bf16.msra.mxu1 %v4747_v35  ;;  %v5871_v13 = vpack.c.bf16 %v1218_v8, %v1208_v7  ;;  %5183 = vpow2.f32 %v4082_v10  ;;  %v5176_v20 = vpop.eup %5175  ;;  %v1147_v15 = vadd.f32 1.0, %v5174_v18  ;;  %v4788_v62 = vld [vmem:[%s6611_s4 + $0x744] ss:$16 sps:$4 sm:$0xff]   ;;  %v4786_v35 = vld [vmem:[%s6611_s4 + $0x740] ss:$16 sps:$4 sm:$0xff]  }
 0x17a   :  { %3319 = vmatpush1.bf16.msra.mxu0 %v4750_v4  ;;  %v5876_v41 = vpack.c.bf16 %v1220_v12, %v1210_v11  ;;  %3277 = vmatprep.subr.bf16.mxu1 %v4755_v5  ;;  %v5178_v27 = vpop.eup %5177  ;;  %v1149_v16 = vadd.f32 1.0, %v5176_v20  ;;  %v4791_v3 = vld [vmem:[%s6611_s4 + $0x524] ss:$16 sps:$4 sm:$0xff]   ;;  %v4792_v8 = vld [vmem:[%s6611_s4 + $0x720] ss:$16 sps:$4 sm:$0xff]  }
 0x17b   :  { %3293 = vmatprep.mubr.bf16.mxu1 %v5871_v13  ;;  %3320 = vmatprep.subr.bf16.mxu0 %v4758_v9  ;;  %v5180_v33 = vpop.eup %5179  ;;  %v1157_v42 = vadd.f32 1.0, %v5178_v27  ;;  %5185 = vrcp.f32 %v1147_v15  ;;  %v4794_v4 = vld [vmem:[%s6611_s4 + $0x724] ss:$16 sps:$4 sm:$0xff]   ;;  %v4798_v18 = vld [vmem:[%s6611_s4 + $0x700] ss:$16 sps:$4 sm:$0xff]  }
 0x17c   :  { %3336 = vmatprep.mubr.bf16.mxu0 %v5876_v41  ;;  %v1159_v31 = vadd.f32 1.0, %v5180_v33  ;;  %5187 = vrcp.f32 %v1149_v16  ;;  %v4797_v9 = vld [vmem:[%s6611_s4 + $0x504] ss:$16 sps:$4 sm:$0xff]   ;;  %v4801_v33 = vld [vmem:[%s6611_s4 + $0x8e0] ss:$16 sps:$4 sm:$0xff]  }
 0x17d   :  { %3278 = vmatpush2.bf16.msra.mxu1 %v4753_v22  ;;  %5189 = vrcp.f32 %v1157_v42  ;;  %v4800_v11 = vld [vmem:[%s6611_s4 + $0x704] ss:$16 sps:$4 sm:$0xff]   ;;  %v4807_v16 = vld [vmem:[%s6611_s4 + $0x8c0] ss:$16 sps:$4 sm:$0xff]   ;;  %v4818_v42 = vld [vmem:[%s6611_s4 + $0xac] ss:$16 sps:$4 sm:$0xff]  }
 0x17e   :  { %3321 = vmatpush2.bf16.msra.mxu0 %v4756_v14  ;;  %3279 = vmatprep.subr.bf16.mxu1 %v4761_v24  ;;  %5191 = vrcp.f32 %v1159_v31  ;;  %v4795_v14 = vld [vmem:[%s6611_s4 + $0x500] ss:$16 sps:$4 sm:$0xff]   ;;  %v4824_v31 = vld [vmem:[%s6611_s4 + $0x8c] ss:$16 sps:$4 sm:$0xff]  }
 0x17f   :  { %3322 = vmatprep.subr.bf16.mxu0 %v4764_v46 }
 0x181   :  { %3280 = vmatpush2.bf16.msra.mxu1 %v4759_v19  ;;  %v4803_v19 = vld [vmem:[%s6611_s4 + $0x8e4] ss:$16 sps:$4 sm:$0xff]  }
 0x182   :  { %v5182_v40 = vpop.eup %5181  ;;  %3323 = vmatpush2.bf16.msra.mxu0 %v4762_v0  ;;  %3281 = vmatprep.subr.bf16.mxu1 %v4767_v21  ;;  %v4806_v21 = vld [vmem:[%s6611_s4 + $0xec] ss:$16 sps:$4 sm:$0xff]  }
 0x183   :  { %3324 = vmatprep.subr.bf16.mxu0 %v4770_v32  ;;  %v1152_v51 = vadd.f32 1.0, %v5182_v40  ;;  %v4815_v40 = vld [vmem:[%s6611_s4 + $0x8a4] ss:$16 sps:$4 sm:$0xff]  }
 0x185   :  { %3282 = vmatpush2.bf16.msra.mxu1 %v4765_v25  ;;  %5193 = vrcp.f32 %v1152_v51  ;;  %v4810_v25 = vld [vmem:[%s6611_s4 + $0xc8] ss:$16 sps:$4 sm:$0xff]   ;;  %v4819_v51 = vld [vmem:[%s6611_s4 + $0x880] ss:$16 sps:$4 sm:$0xff]  }
 0x186   :  { %v5184_v56 = vpop.eup %5183  ;;  %3325 = vmatpush2.bf16.msra.mxu0 %v4768_v45  ;;  %3283 = vmatprep.subr.bf16.mxu1 %v4773_v47  ;;  %v4816_v45 = vld [vmem:[%s6611_s4 + $0xa8] ss:$16 sps:$4 sm:$0xff]   ;;  %v4821_v47 = vld [vmem:[%s6611_s4 + $0x884] ss:$16 sps:$4 sm:$0xff]  }
 0x187   :  { %3326 = vmatprep.subr.bf16.mxu0 %v4776_v48  ;;  %v1162_v43 = vadd.f32 1.0, %v5184_v56  ;;  %v384_v48 = vrot.slane %v5807_v36, %v5416_v17  ;;  %v4827_v56 = vld [vmem:[%s6611_s4 + $0x864] ss:$16 sps:$4 sm:$0xff]   ;;  %v4830_v36 = vld [vmem:[%s6611_s4 + $0x6c] ss:$16 sps:$4 sm:$0xff]  }
 0x188   :  { %v5186_v5 = vpop.eup %5185 }
 0x189   :  { %3284 = vmatpush2.bf16.msra.mxu1 %v4771_v53  ;;  %5195 = vrcp.f32 %v1162_v43  ;;  %v5188_v7 = vpop.eup %5187  ;;  %v4822_v53 = vld [vmem:[%s6611_s4 + $0x88] ss:$16 sps:$4 sm:$0xff]  }
 0x18a   :  { %3327 = vmatpush2.bf16.msra.mxu0 %v4774_v57  ;;  %3285 = vmatprep.subr.bf16.mxu1 %v4779_v58  ;;  %v5190_v10 = vpop.eup %5189  ;;  %v1209_v20 = vmul.f32 %v5188_v7, %v5790_v29  ;;  %v4804_v29 = vld [vmem:[%s6611_s4 + $0xe8] ss:$16 sps:$4 sm:$0xff]   ;;  %v6040_v57 = vadd.f32 %v5829_v52, %v384_v48  ;;  %v4825_v58 = vld [vmem:[%s6611_s4 + $0x860] ss:$16 sps:$4 sm:$0xff]   ;;  %v4836_v52 = vld [vmem:[%s6611_s4 + $0x4c] ss:$16 sps:$4 sm:$0xff]  }
 0x18b   :  { %3328 = vmatprep.subr.bf16.mxu0 %v4782_v59  ;;  %v5192_v12 = vpop.eup %5191  ;;  %v1217_v46 = vmul.f32 %v5190_v10, %v5796_v34  ;;  %v1207_v34 = vmul.f32 %v5186_v5, %v5787_v23  ;;  %v4809_v23 = vld [vmem:[%s6611_s4 + $0x8c4] ss:$16 sps:$4 sm:$0xff]   ;;  %v6046_v59 = vadd.f32 %v5846_v37, %v384_v48  ;;  %v4828_v43 = vld [vmem:[%s6611_s4 + $0x68] ss:$16 sps:$4 sm:$0xff]   ;;  %v4831_v37 = vld [vmem:[%s6611_s4 + $0x840] ss:$16 sps:$4 sm:$0xff]  }
 0x18c   :  { %v1219_v0 = vmul.f32 %v5192_v12, %v5810_v39  ;;  %v4845_v5 = vld [vmem:[%s6611_s4 + $0x804] ss:$16 sps:$4 sm:$0xff]   ;;  %v4843_v7 = vld [vmem:[%s6611_s4 + $0x800] ss:$16 sps:$4 sm:$0xff]   ;;  %v4854_v10 = vld [vmem:[%s6611_s4 + $0x1ec] ss:$16 sps:$4 sm:$0xff]  }
 0x18d   :  { %3286 = vmatpush2.bf16.msra.mxu1 %v4777_v38  ;;  %v5982_v15 = vpack.c.bf16 %v1217_v46, %v1207_v34  ;;  %v4833_v38 = vld [vmem:[%s6611_s4 + $0x844] ss:$16 sps:$4 sm:$0xff]   ;;  %v4852_v12 = vld [vmem:[%s6611_s4 + $0x1e8] ss:$16 sps:$4 sm:$0xff]   ;;  %v4861_v34 = vld [vmem:[%s6611_s4 + $0x9a0] ss:$16 sps:$4 sm:$0xff]  }
 0x18e   :  { %3329 = vmatpush2.bf16.msra.mxu0 %v4780_v55  ;;  %3287 = vmatprep.subr.bf16.mxu1 %v4785_v61  ;;  %v5987_v39 = vpack.c.bf16 %v1219_v0, %v1209_v20  ;;  %v4071_v55 = vmul.f32 -1.442695, %v6040_v57  ;;  %v4081_v61 = vmul.f32 -1.442695, %v6046_v59  ;;  %v4866_v0 = vld [vmem:[%s6611_s4 + $0x1ac] ss:$16 sps:$4 sm:$0xff]  }
 0x18f   :  { %3330 = vmatprep.subr.bf16.mxu0 %v4788_v62  ;;  %v4834_v62 = vld [vmem:[%s6611_s4 + $0x48] ss:$16 sps:$4 sm:$0xff]   ;;  %v4887_v48 = vld [vmem:[%s6611_s4 + $0x924] ss:$16 sps:$4 sm:$0xff]  }
 0x190   :  { %5197 = vpow2.f32 %v4071_v55 }
 0x191   :  { %3288 = vmatpush2.bf16.msra.mxu1 %v4783_v1  ;;  %v4839_v1 = vld [vmem:[%s6611_s4 + $0x824] ss:$16 sps:$4 sm:$0xff]   ;;  %5199 = vpow2.f32 %v4081_v61  ;;  %v4894_v61 = vld [vmem:[%s6611_s4 + $0x108] ss:$16 sps:$4 sm:$0xff]  }
 0x192   :  { %3331 = vmatpush2.bf16.msra.mxu0 %v4786_v35  ;;  %3289 = vmatprep.subr.bf16.mxu1 %v4791_v3  ;;  %v5194_v22 = vpop.eup %5193  ;;  %v4842_v35 = vld [vmem:[%s6611_s4 + $0x2c] ss:$16 sps:$4 sm:$0xff]   ;;  %v4837_v3 = vld [vmem:[%s6611_s4 + $0x820] ss:$16 sps:$4 sm:$0xff]  }
 0x193   :  { %3332 = vmatprep.subr.bf16.mxu0 %v4794_v4  ;;  %v1212_v27 = vmul.f32 %v5194_v22, %v5838_v49  ;;  %v4812_v49 = vld [vmem:[%s6611_s4 + $0xcc] ss:$16 sps:$4 sm:$0xff]   ;;  %v4840_v4 = vld [vmem:[%s6611_s4 + $0x28] ss:$16 sps:$4 sm:$0xff]   ;;  %v4857_v22 = vld [vmem:[%s6611_s4 + $0x9c4] ss:$16 sps:$4 sm:$0xff]  }
 0x195   :  { %3290 = vmatpush2.bf16.msra.mxu1 %v4789_v6  ;;  %v4848_v6 = vld [vmem:[%s6611_s4 + $0xc] ss:$16 sps:$4 sm:$0xff]  }
 0x196   :  { %v5196_v24 = vpop.eup %5195  ;;  %3333 = vmatpush2.bf16.msra.mxu0 %v4792_v8  ;;  %3291 = vmatprep.subr.bf16.mxu1 %v4797_v9  ;;  %v4846_v8 = vld [vmem:[%s6611_s4 + $0x8] ss:$16 sps:$4 sm:$0xff]   ;;  %v4851_v9 = vld [vmem:[%s6611_s4 + $0x9e4] ss:$16 sps:$4 sm:$0xff]  }
 0x197   :  { %3334 = vmatprep.subr.bf16.mxu0 %v4800_v11  ;;  %v1222_v32 = vmul.f32 %v5196_v24, %v5855_v2  ;;  %v4849_v11 = vld [vmem:[%s6611_s4 + $0x9e0] ss:$16 sps:$4 sm:$0xff]  }
 0x198   :  { %v4855_v24 = vld [vmem:[%s6611_s4 + $0x9c0] ss:$16 sps:$4 sm:$0xff]  }
 0x199   :  { %3292 = vmatpush2.bf16.msra.mxu1 %v4795_v14  ;;  %v5996_v2 = vpack.c.bf16 %v1222_v32, %v1212_v27  ;;  %v4860_v14 = vld [vmem:[%s6611_s4 + $0x1cc] ss:$16 sps:$4 sm:$0xff]   ;;  %v4864_v32 = vld [vmem:[%s6611_s4 + $0x1a8] ss:$16 sps:$4 sm:$0xff]  }
 0x19a   :  { %3335 = vmatpush2.bf16.msra.mxu0 %v4798_v18  ;;  %3347 = vmatprep.subr.bf16.mxu1 %v4803_v19  ;;  %v4858_v18 = vld [vmem:[%s6611_s4 + $0x1c8] ss:$16 sps:$4 sm:$0xff]   ;;  %v4863_v19 = vld [vmem:[%s6611_s4 + $0x9a4] ss:$16 sps:$4 sm:$0xff]  }
 0x19b   :  { %3390 = vmatprep.subr.bf16.mxu0 %v4806_v21 }
 0x19c   :  { %3294 = vmatmul.mubr.bf16.vlgmr.msra.gmra.mxu1 %v5982_v15 }
 0x19d   :  { %3337 = vmatmul.mubr.bf16.vlgmr.msra.gmra.mxu0 %v5987_v39  ;;  %3348 = vmatpush1.bf16.msra.mxu1 %v4801_v33  ;;  %v5198_v46 = vpop.eup %5197  ;;  %v4869_v33 = vld [vmem:[%s6611_s4 + $0x984] ss:$16 sps:$4 sm:$0xff]  }
 0x19e   :  { %3391 = vmatpush1.bf16.msra.mxu0 %v4804_v29  ;;  %3422 = vmatprep.mubr.bf16.mxu0 %v5722_v60  ;;  %v4813_v60 = vld [vmem:[%s6611_s4 + $0x8a0] ss:$16 sps:$4 sm:$0xff]   ;;  %v5200_v20 = vpop.eup %5199  ;;  %v1151_v21 = vadd.f32 1.0, %v5198_v46  ;;  %v4872_v29 = vld [vmem:[%s6611_s4 + $0x18c] ss:$16 sps:$4 sm:$0xff]  }
 0x19f   :  { %3349 = vmatprep.subr.bf16.mxu1 %v4809_v23  ;;  %3392 = vmatprep.subr.bf16.mxu0 %v4812_v49  ;;  %v1161_v27 = vadd.f32 1.0, %v5200_v20  ;;  %v4867_v23 = vld [vmem:[%s6611_s4 + $0x980] ss:$16 sps:$4 sm:$0xff]   ;;  %v4870_v49 = vld [vmem:[%s6611_s4 + $0x188] ss:$16 sps:$4 sm:$0xff]  }
 0x1a0   :  { %3379 = vmatprep.mubr.bf16.mxu1 %v5996_v2  ;;  %5201 = vrcp.f32 %v1151_v21  ;;  %v4929_v46 = vld [vmem:[%s6611_s4 + $0x24c] ss:$16 sps:$4 sm:$0xff]   ;;  %v4930_v20 = vld [vmem:[%s6611_s4 + $0x448] ss:$16 sps:$4 sm:$0xff]  }
 0x1a1   :  { %3350 = vmatpush1.bf16.msra.mxu1 %v4807_v16  ;;  %5203 = vrcp.f32 %v1161_v27  ;;  %v4875_v16 = vld [vmem:[%s6611_s4 + $0x964] ss:$16 sps:$4 sm:$0xff]   ;;  %v4938_v21 = vld [vmem:[%s6611_s4 + $0x42c] ss:$16 sps:$4 sm:$0xff]   ;;  %v4936_v27 = vld [vmem:[%s6611_s4 + $0x428] ss:$16 sps:$4 sm:$0xff]  }
 0x1a2   :  { %3393 = vmatpush1.bf16.msra.mxu0 %v4810_v25  ;;  %3351 = vmatprep.subr.bf16.mxu1 %v4815_v40  ;;  %v4878_v25 = vld [vmem:[%s6611_s4 + $0x16c] ss:$16 sps:$4 sm:$0xff]   ;;  %v4873_v40 = vld [vmem:[%s6611_s4 + $0x960] ss:$16 sps:$4 sm:$0xff]  }
 0x1a3   :  { %3394 = vmatprep.subr.bf16.mxu0 %v4818_v42  ;;  %v4876_v42 = vld [vmem:[%s6611_s4 + $0x168] ss:$16 sps:$4 sm:$0xff]  }
 0x1a5   :  { %3352 = vmatpush1.bf16.msra.mxu1 %v4813_v60  ;;  %v4881_v60 = vld [vmem:[%s6611_s4 + $0x944] ss:$16 sps:$4 sm:$0xff]  }
 0x1a6   :  { %3395 = vmatpush1.bf16.msra.mxu0 %v4816_v45  ;;  %3353 = vmatprep.subr.bf16.mxu1 %v4821_v47  ;;  %v4884_v45 = vld [vmem:[%s6611_s4 + $0x14c] ss:$16 sps:$4 sm:$0xff]   ;;  %v4879_v47 = vld [vmem:[%s6611_s4 + $0x940] ss:$16 sps:$4 sm:$0xff]  }
 0x1a7   :  { %3396 = vmatprep.subr.bf16.mxu0 %v4824_v31  ;;  %v4882_v31 = vld [vmem:[%s6611_s4 + $0x148] ss:$16 sps:$4 sm:$0xff]  }
 0x1a9   :  { %3354 = vmatpush1.bf16.msra.mxu1 %v4819_v51  ;;  %v4890_v51 = vld [vmem:[%s6611_s4 + $0x12c] ss:$16 sps:$4 sm:$0xff]  }
 0x1aa   :  { %3397 = vmatpush1.bf16.msra.mxu0 %v4822_v53  ;;  %3355 = vmatprep.subr.bf16.mxu1 %v4827_v56  ;;  %v4885_v53 = vld [vmem:[%s6611_s4 + $0x920] ss:$16 sps:$4 sm:$0xff]  }
 0x1ab   :  { %3398 = vmatprep.subr.bf16.mxu0 %v4830_v36  ;;  %v4888_v36 = vld [vmem:[%s6611_s4 + $0x128] ss:$16 sps:$4 sm:$0xff]  }
 0x1ad   :  { %3356 = vmatpush1.bf16.msra.mxu1 %v4825_v58  ;;  %v5202_v56 = vpop.eup %5201  ;;  %v4893_v58 = vld [vmem:[%s6611_s4 + $0x904] ss:$16 sps:$4 sm:$0xff]  }
 0x1ae   :  { %3399 = vmatpush1.bf16.msra.mxu0 %v4828_v43  ;;  %3357 = vmatprep.subr.bf16.mxu1 %v4833_v38  ;;  %v5204_v43 = vpop.eup %5203  ;;  %v4896_v38 = vld [vmem:[%s6611_s4 + $0x10c] ss:$16 sps:$4 sm:$0xff]   ;;  %v1211_v55 = vmul.f32 %v5202_v56, %v6040_v57  ;;  %v4897_v57 = vld [vmem:[%s6611_s4 + $0x2e8] ss:$16 sps:$4 sm:$0xff]  }
 0x1af   :  { %3400 = vmatprep.subr.bf16.mxu0 %v4836_v52  ;;  %v4891_v52 = vld [vmem:[%s6611_s4 + $0x900] ss:$16 sps:$4 sm:$0xff]   ;;  %v4965_v56 = vld [vmem:[%s6611_s4 + $0x38c] ss:$16 sps:$4 sm:$0xff]  }
 0x1b1   :  { %3358 = vmatpush1.bf16.msra.mxu1 %v4831_v37  ;;  %v1221_v37 = vmul.f32 %v5204_v43, %v6046_v59  ;;  %v4966_v43 = vld [vmem:[%s6611_s4 + $0x588] ss:$16 sps:$4 sm:$0xff]  }
 0x1b2   :  { %3401 = vmatpush1.bf16.msra.mxu0 %v4834_v62  ;;  %3359 = vmatprep.subr.bf16.mxu1 %v4839_v1  ;;  %v4899_v62 = vld [vmem:[%s6611_s4 + $0x2ec] ss:$16 sps:$4 sm:$0xff]  }
 0x1b3   :  { %3402 = vmatprep.subr.bf16.mxu0 %v4842_v35  ;;  %v4902_v1 = vld [vmem:[%s6611_s4 + $0x4ec] ss:$16 sps:$4 sm:$0xff]   ;;  %v6196_v59 = vpack.c.bf16 %v1221_v37, %v1211_v55  ;;  %v4900_v35 = vld [vmem:[%s6611_s4 + $0x4e8] ss:$16 sps:$4 sm:$0xff]  }
 0x1b4   :  { %v4969_v55 = vld [vmem:[%s6611_s4 + $0x368] ss:$16 sps:$4 sm:$0xff]  }
 0x1b5   :  { %3360 = vmatpush1.bf16.msra.mxu1 %v4837_v3  ;;  %v4905_v3 = vld [vmem:[%s6611_s4 + $0x2cc] ss:$16 sps:$4 sm:$0xff]   ;;  %v4972_v37 = vld [vmem:[%s6611_s4 + $0x568] ss:$16 sps:$4 sm:$0xff]  }
 0x1b6   :  { %3403 = vmatpush1.bf16.msra.mxu0 %v4840_v4  ;;  %3361 = vmatprep.subr.bf16.mxu1 %v4845_v5  ;;  %v4908_v4 = vld [vmem:[%s6611_s4 + $0x4cc] ss:$16 sps:$4 sm:$0xff]   ;;  %v4903_v5 = vld [vmem:[%s6611_s4 + $0x2c8] ss:$16 sps:$4 sm:$0xff]  }
 0x1b7   :  { %3404 = vmatprep.subr.bf16.mxu0 %v4848_v6  ;;  %v4906_v6 = vld [vmem:[%s6611_s4 + $0x4c8] ss:$16 sps:$4 sm:$0xff]  }
 0x1b9   :  { %3362 = vmatpush1.bf16.msra.mxu1 %v4843_v7  ;;  %v4911_v7 = vld [vmem:[%s6611_s4 + $0x2ac] ss:$16 sps:$4 sm:$0xff]  }
 0x1ba   :  { %3405 = vmatpush1.bf16.msra.mxu0 %v4846_v8  ;;  %3363 = vmatprep.subr.bf16.mxu1 %v4851_v9  ;;  %v4912_v8 = vld [vmem:[%s6611_s4 + $0x4a8] ss:$16 sps:$4 sm:$0xff]   ;;  %v4920_v9 = vld [vmem:[%s6611_s4 + $0x48c] ss:$16 sps:$4 sm:$0xff]  }
 0x1bb   :  { %3406 = vmatprep.subr.bf16.mxu0 %v4854_v10  ;;  %v4915_v10 = vld [vmem:[%s6611_s4 + $0x288] ss:$16 sps:$4 sm:$0xff]  }
 0x1bd   :  { %3364 = vmatpush2.bf16.msra.mxu1 %v4849_v11  ;;  %v4918_v11 = vld [vmem:[%s6611_s4 + $0x488] ss:$16 sps:$4 sm:$0xff]  }
 0x1be   :  { %3407 = vmatpush2.bf16.msra.mxu0 %v4852_v12  ;;  %3365 = vmatprep.subr.bf16.mxu1 %v4857_v22  ;;  %v4923_v12 = vld [vmem:[%s6611_s4 + $0x26c] ss:$16 sps:$4 sm:$0xff]  }
 0x1bf   :  { %3408 = vmatprep.subr.bf16.mxu0 %v4860_v14  ;;  %v4926_v22 = vld [vmem:[%s6611_s4 + $0x46c] ss:$16 sps:$4 sm:$0xff]   ;;  %v4921_v14 = vld [vmem:[%s6611_s4 + $0x268] ss:$16 sps:$4 sm:$0xff]  }
 0x1c1   :  { %3366 = vmatpush2.bf16.msra.mxu1 %v4855_v24  ;;  %v4924_v24 = vld [vmem:[%s6611_s4 + $0x468] ss:$16 sps:$4 sm:$0xff]  }
 0x1c2   :  { %3409 = vmatpush2.bf16.msra.mxu0 %v4858_v18  ;;  %3367 = vmatprep.subr.bf16.mxu1 %v4863_v19  ;;  %v4932_v18 = vld [vmem:[%s6611_s4 + $0x44c] ss:$16 sps:$4 sm:$0xff]   ;;  %v4927_v19 = vld [vmem:[%s6611_s4 + $0x248] ss:$16 sps:$4 sm:$0xff]  }
 0x1c3   :  { %3410 = vmatprep.subr.bf16.mxu0 %v4866_v0  ;;  %v4935_v0 = vld [vmem:[%s6611_s4 + $0x22c] ss:$16 sps:$4 sm:$0xff]  }
 0x1c5   :  { %3368 = vmatpush2.bf16.msra.mxu1 %v4861_v34  ;;  %v4933_v34 = vld [vmem:[%s6611_s4 + $0x228] ss:$16 sps:$4 sm:$0xff]  }
 0x1c6   :  { %3411 = vmatpush2.bf16.msra.mxu0 %v4864_v32  ;;  %3369 = vmatprep.subr.bf16.mxu1 %v4869_v33  ;;  %v4941_v32 = vld [vmem:[%s6611_s4 + $0x20c] ss:$16 sps:$4 sm:$0xff]  }
 0x1c7   :  { %3412 = vmatprep.subr.bf16.mxu0 %v4872_v29  ;;  %v4944_v33 = vld [vmem:[%s6611_s4 + $0x40c] ss:$16 sps:$4 sm:$0xff]   ;;  %v4939_v29 = vld [vmem:[%s6611_s4 + $0x208] ss:$16 sps:$4 sm:$0xff]  }
 0x1c9   :  { %3370 = vmatpush2.bf16.msra.mxu1 %v4867_v23  ;;  %v4942_v23 = vld [vmem:[%s6611_s4 + $0x408] ss:$16 sps:$4 sm:$0xff]  }
 0x1ca   :  { %3413 = vmatpush2.bf16.msra.mxu0 %v4870_v49  ;;  %3371 = vmatprep.subr.bf16.mxu1 %v4875_v16  ;;  %v4947_v49 = vld [vmem:[%s6611_s4 + $0x3ec] ss:$16 sps:$4 sm:$0xff]  }
 0x1cb   :  { %3414 = vmatprep.subr.bf16.mxu0 %v4878_v25  ;;  %v4950_v16 = vld [vmem:[%s6611_s4 + $0x5ec] ss:$16 sps:$4 sm:$0xff]   ;;  %v4945_v25 = vld [vmem:[%s6611_s4 + $0x3e8] ss:$16 sps:$4 sm:$0xff]  }
 0x1cd   :  { %3372 = vmatpush2.bf16.msra.mxu1 %v4873_v40  ;;  %v4948_v40 = vld [vmem:[%s6611_s4 + $0x5e8] ss:$16 sps:$4 sm:$0xff]  }
 0x1ce   :  { %3415 = vmatpush2.bf16.msra.mxu0 %v4876_v42  ;;  %3373 = vmatprep.subr.bf16.mxu1 %v4881_v60  ;;  %v4953_v42 = vld [vmem:[%s6611_s4 + $0x3cc] ss:$16 sps:$4 sm:$0xff]  }
 0x1cf   :  { %3416 = vmatprep.subr.bf16.mxu0 %v4884_v45  ;;  %v4956_v60 = vld [vmem:[%s6611_s4 + $0x5cc] ss:$16 sps:$4 sm:$0xff]   ;;  %v4951_v45 = vld [vmem:[%s6611_s4 + $0x3c8] ss:$16 sps:$4 sm:$0xff]  }
 0x1d1   :  { %3374 = vmatpush2.bf16.msra.mxu1 %v4879_v47  ;;  %v4954_v47 = vld [vmem:[%s6611_s4 + $0x5c8] ss:$16 sps:$4 sm:$0xff]  }
 0x1d2   :  { %3417 = vmatpush2.bf16.msra.mxu0 %v4882_v31  ;;  %3375 = vmatprep.subr.bf16.mxu1 %v4887_v48  ;;  %v4959_v31 = vld [vmem:[%s6611_s4 + $0x3ac] ss:$16 sps:$4 sm:$0xff]  }
 0x1d3   :  { %3418 = vmatprep.subr.bf16.mxu0 %v4890_v51  ;;  %v4962_v48 = vld [vmem:[%s6611_s4 + $0x5ac] ss:$16 sps:$4 sm:$0xff]   ;;  %v4957_v51 = vld [vmem:[%s6611_s4 + $0x3a8] ss:$16 sps:$4 sm:$0xff]  }
 0x1d5   :  { %3376 = vmatpush2.bf16.msra.mxu1 %v4885_v53  ;;  %v4960_v53 = vld [vmem:[%s6611_s4 + $0x5a8] ss:$16 sps:$4 sm:$0xff]  }
 0x1d6   :  { %3419 = vmatpush2.bf16.msra.mxu0 %v4888_v36  ;;  %3377 = vmatprep.subr.bf16.mxu1 %v4893_v58  ;;  %v4968_v36 = vld [vmem:[%s6611_s4 + $0x58c] ss:$16 sps:$4 sm:$0xff]   ;;  %v4963_v58 = vld [vmem:[%s6611_s4 + $0x388] ss:$16 sps:$4 sm:$0xff]  }
 0x1d7   :  { %3420 = vmatprep.subr.bf16.mxu0 %v4896_v38  ;;  %v4971_v38 = vld [vmem:[%s6611_s4 + $0x36c] ss:$16 sps:$4 sm:$0xff]  }
 0x1d9   :  { %3378 = vmatpush2.bf16.msra.mxu1 %v4891_v52  ;;  %v4974_v52 = vld [vmem:[%s6611_s4 + $0x56c] ss:$16 sps:$4 sm:$0xff]  }
 0x1da   :  { %3421 = vmatpush2.bf16.msra.mxu0 %v4894_v61  ;;  %3433 = vmatprep.subr.bf16.mxu1 %v4899_v62  ;;  %v4977_v61 = vld [vmem:[%s6611_s4 + $0x34c] ss:$16 sps:$4 sm:$0xff]  }
 0x1db   :  { %3476 = vmatprep.subr.bf16.mxu0 %v4902_v1  ;;  %v4980_v62 = vld [vmem:[%s6611_s4 + $0x54c] ss:$16 sps:$4 sm:$0xff]   ;;  %v4975_v1 = vld [vmem:[%s6611_s4 + $0x348] ss:$16 sps:$4 sm:$0xff]  }
 0x1dc   :  { %3380 = vmatmul.mubr.bf16.vlgmr.msra.gmra.mxu1 %v6196_v59 }
 0x1dd   :  { %3423 = vmatmul.mubr.bf16.vlgmr.msra.gmra.mxu0 %v5727_v50  ;;  %3434 = vmatpush1.bf16.msra.mxu1 %v4897_v57  ;;  %v4914_v50 = vld [vmem:[%s6611_s4 + $0x4ac] ss:$16 sps:$4 sm:$0xff]   ;;  %v4978_v57 = vld [vmem:[%s6611_s4 + $0x548] ss:$16 sps:$4 sm:$0xff]  }
 0x1de   :  { %3465 = vmatprep.mubr.bf16.mxu1 %v5729_v54  ;;  %3477 = vmatpush1.bf16.msra.mxu0 %v4900_v35  ;;  %v4909_v54 = vld [vmem:[%s6611_s4 + $0x2a8] ss:$16 sps:$4 sm:$0xff]   ;;  %v4983_v35 = vld [vmem:[%s6611_s4 + $0x32c] ss:$16 sps:$4 sm:$0xff]  }
 0x1df   :  { %3508 = vmatprep.mubr.bf16.mxu0 %v5871_v13  ;;  %3435 = vmatprep.subr.bf16.mxu1 %v4905_v3  ;;  %v4917_v13 = vld [vmem:[%s6611_s4 + $0x28c] ss:$16 sps:$4 sm:$0xff]  }
 0x1e0   :  { %3478 = vmatprep.subr.bf16.mxu0 %v4908_v4  ;;  %v4986_v3 = vld [vmem:[%s6611_s4 + $0x52c] ss:$16 sps:$4 sm:$0xff]   ;;  %v4981_v4 = vld [vmem:[%s6611_s4 + $0x328] ss:$16 sps:$4 sm:$0xff]  }
 0x1e1   :  { %3436 = vmatpush1.bf16.msra.mxu1 %v4903_v5  ;;  %v4984_v5 = vld [vmem:[%s6611_s4 + $0x528] ss:$16 sps:$4 sm:$0xff]  }
 0x1e2   :  { %3479 = vmatpush1.bf16.msra.mxu0 %v4906_v6  ;;  %3437 = vmatprep.subr.bf16.mxu1 %v4911_v7  ;;  %v4989_v6 = vld [vmem:[%s6611_s4 + $0x30c] ss:$16 sps:$4 sm:$0xff]  }
 0x1e3   :  { %3480 = vmatprep.subr.bf16.mxu0 %v4914_v50  ;;  %v4992_v7 = vld [vmem:[%s6611_s4 + $0x50c] ss:$16 sps:$4 sm:$0xff]   ;;  %v4987_v50 = vld [vmem:[%s6611_s4 + $0x308] ss:$16 sps:$4 sm:$0xff]  }
 0x1e5   :  { %3438 = vmatpush1.bf16.msra.mxu1 %v4909_v54  ;;  %v4990_v54 = vld [vmem:[%s6611_s4 + $0x508] ss:$16 sps:$4 sm:$0xff]  }
 0x1e6   :  { %3481 = vmatpush1.bf16.msra.mxu0 %v4912_v8  ;;  %3439 = vmatprep.subr.bf16.mxu1 %v4917_v13  ;;  %v4995_v8 = vld [vmem:[%s6611_s4 + $0x6ec] ss:$16 sps:$4 sm:$0xff]  }
 0x1e7   :  { %3482 = vmatprep.subr.bf16.mxu0 %v4920_v9  ;;  %v4998_v13 = vld [vmem:[%s6611_s4 + $0x8ec] ss:$16 sps:$4 sm:$0xff]   ;;  %v4993_v9 = vld [vmem:[%s6611_s4 + $0x6e8] ss:$16 sps:$4 sm:$0xff]  }
 0x1e9   :  { %3440 = vmatpush1.bf16.msra.mxu1 %v4915_v10  ;;  %v4996_v10 = vld [vmem:[%s6611_s4 + $0x8e8] ss:$16 sps:$4 sm:$0xff]  }
 0x1ea   :  { %3483 = vmatpush1.bf16.msra.mxu0 %v4918_v11  ;;  %3441 = vmatprep.subr.bf16.mxu1 %v4923_v12  ;;  %v5001_v11 = vld [vmem:[%s6611_s4 + $0x6cc] ss:$16 sps:$4 sm:$0xff]  }
 0x1eb   :  { %3484 = vmatprep.subr.bf16.mxu0 %v4926_v22  ;;  %v5004_v12 = vld [vmem:[%s6611_s4 + $0x8cc] ss:$16 sps:$4 sm:$0xff]   ;;  %v4999_v22 = vld [vmem:[%s6611_s4 + $0x6c8] ss:$16 sps:$4 sm:$0xff]  }
 0x1ed   :  { %3442 = vmatpush1.bf16.msra.mxu1 %v4921_v14  ;;  %v5002_v14 = vld [vmem:[%s6611_s4 + $0x8c8] ss:$16 sps:$4 sm:$0xff]  }
 0x1ee   :  { %3485 = vmatpush1.bf16.msra.mxu0 %v4924_v24  ;;  %3443 = vmatprep.subr.bf16.mxu1 %v4929_v46  ;;  %v5008_v24 = vld [vmem:[%s6611_s4 + $0x8a8] ss:$16 sps:$4 sm:$0xff]   ;;  %v5016_v46 = vld [vmem:[%s6611_s4 + $0x88c] ss:$16 sps:$4 sm:$0xff]  }
 0x1ef   :  { %3486 = vmatprep.subr.bf16.mxu0 %v4932_v18  ;;  %v5011_v18 = vld [vmem:[%s6611_s4 + $0x688] ss:$16 sps:$4 sm:$0xff]  }
 0x1f1   :  { %3444 = vmatpush1.bf16.msra.mxu1 %v4927_v19  ;;  %v5014_v19 = vld [vmem:[%s6611_s4 + $0x888] ss:$16 sps:$4 sm:$0xff]  }
 0x1f2   :  { %3487 = vmatpush1.bf16.msra.mxu0 %v4930_v20  ;;  %3445 = vmatprep.subr.bf16.mxu1 %v4935_v0  ;;  %v5019_v20 = vld [vmem:[%s6611_s4 + $0x66c] ss:$16 sps:$4 sm:$0xff]  }
 0x1f3   :  { %3488 = vmatprep.subr.bf16.mxu0 %v4938_v21  ;;  %v5022_v0 = vld [vmem:[%s6611_s4 + $0x86c] ss:$16 sps:$4 sm:$0xff]   ;;  %v5017_v21 = vld [vmem:[%s6611_s4 + $0x668] ss:$16 sps:$4 sm:$0xff]  }
 0x1f5   :  { %3446 = vmatpush1.bf16.msra.mxu1 %v4933_v34  ;;  %v5020_v34 = vld [vmem:[%s6611_s4 + $0x868] ss:$16 sps:$4 sm:$0xff]  }
 0x1f6   :  { %3489 = vmatpush1.bf16.msra.mxu0 %v4936_v27  ;;  %3447 = vmatprep.subr.bf16.mxu1 %v4941_v32  ;;  %v5025_v27 = vld [vmem:[%s6611_s4 + $0x64c] ss:$16 sps:$4 sm:$0xff]  }
 0x1f7   :  { %3490 = vmatprep.subr.bf16.mxu0 %v4944_v33  ;;  %v5028_v32 = vld [vmem:[%s6611_s4 + $0x84c] ss:$16 sps:$4 sm:$0xff]   ;;  %v5023_v33 = vld [vmem:[%s6611_s4 + $0x648] ss:$16 sps:$4 sm:$0xff]  }
 0x1f9   :  { %3448 = vmatpush1.bf16.msra.mxu1 %v4939_v29  ;;  %v5026_v29 = vld [vmem:[%s6611_s4 + $0x848] ss:$16 sps:$4 sm:$0xff]  }
 0x1fa   :  { %3491 = vmatpush1.bf16.msra.mxu0 %v4942_v23  ;;  %3449 = vmatprep.subr.bf16.mxu1 %v4947_v49  ;;  %v5031_v23 = vld [vmem:[%s6611_s4 + $0x62c] ss:$16 sps:$4 sm:$0xff]  }
 0x1fb   :  { %3492 = vmatprep.subr.bf16.mxu0 %v4950_v16  ;;  %v5034_v49 = vld [vmem:[%s6611_s4 + $0x82c] ss:$16 sps:$4 sm:$0xff]   ;;  %v5029_v16 = vld [vmem:[%s6611_s4 + $0x628] ss:$16 sps:$4 sm:$0xff]  }
 0x1fd   :  { %3450 = vmatpush2.bf16.msra.mxu1 %v4945_v25  ;;  %v5032_v25 = vld [vmem:[%s6611_s4 + $0x828] ss:$16 sps:$4 sm:$0xff]  }
 0x1fe   :  { %3493 = vmatpush2.bf16.msra.mxu0 %v4948_v40  ;;  %3451 = vmatprep.subr.bf16.mxu1 %v4953_v42  ;;  %v5037_v40 = vld [vmem:[%s6611_s4 + $0x60c] ss:$16 sps:$4 sm:$0xff]  }
 0x1ff   :  { %3494 = vmatprep.subr.bf16.mxu0 %v4956_v60  ;;  %v5040_v42 = vld [vmem:[%s6611_s4 + $0x80c] ss:$16 sps:$4 sm:$0xff]   ;;  %v5035_v60 = vld [vmem:[%s6611_s4 + $0x608] ss:$16 sps:$4 sm:$0xff]  }
 0x201   :  { %3452 = vmatpush2.bf16.msra.mxu1 %v4951_v45  ;;  %v5038_v45 = vld [vmem:[%s6611_s4 + $0x808] ss:$16 sps:$4 sm:$0xff]  }
 0x202   :  { %3495 = vmatpush2.bf16.msra.mxu0 %v4954_v47  ;;  %3453 = vmatprep.subr.bf16.mxu1 %v4959_v31  ;;  %v5043_v47 = vld [vmem:[%s6611_s4 + $0x7ec] ss:$16 sps:$4 sm:$0xff]  }
 0x203   :  { %3496 = vmatprep.subr.bf16.mxu0 %v4962_v48  ;;  %v5046_v31 = vld [vmem:[%s6611_s4 + $0x9ec] ss:$16 sps:$4 sm:$0xff]   ;;  %v5041_v48 = vld [vmem:[%s6611_s4 + $0x7e8] ss:$16 sps:$4 sm:$0xff]  }
 0x205   :  { %3454 = vmatpush2.bf16.msra.mxu1 %v4957_v51  ;;  %v5044_v51 = vld [vmem:[%s6611_s4 + $0x9e8] ss:$16 sps:$4 sm:$0xff]  }
 0x206   :  { %3497 = vmatpush2.bf16.msra.mxu0 %v4960_v53  ;;  %3455 = vmatprep.subr.bf16.mxu1 %v4965_v56  ;;  %v5049_v53 = vld [vmem:[%s6611_s4 + $0x7cc] ss:$16 sps:$4 sm:$0xff]  }
 0x207   :  { %3498 = vmatprep.subr.bf16.mxu0 %v4968_v36  ;;  %v5052_v56 = vld [vmem:[%s6611_s4 + $0x9cc] ss:$16 sps:$4 sm:$0xff]   ;;  %v5047_v36 = vld [vmem:[%s6611_s4 + $0x7c8] ss:$16 sps:$4 sm:$0xff]  }
 0x209   :  { %3456 = vmatpush2.bf16.msra.mxu1 %v4963_v58  ;;  %v5050_v58 = vld [vmem:[%s6611_s4 + $0x9c8] ss:$16 sps:$4 sm:$0xff]  }
 0x20a   :  { %3499 = vmatpush2.bf16.msra.mxu0 %v4966_v43  ;;  %3457 = vmatprep.subr.bf16.mxu1 %v4971_v38  ;;  %v5055_v43 = vld [vmem:[%s6611_s4 + $0x7ac] ss:$16 sps:$4 sm:$0xff]  }
 0x20b   :  { %3500 = vmatprep.subr.bf16.mxu0 %v4974_v52  ;;  %v5058_v38 = vld [vmem:[%s6611_s4 + $0x9ac] ss:$16 sps:$4 sm:$0xff]   ;;  %v5053_v52 = vld [vmem:[%s6611_s4 + $0x7a8] ss:$16 sps:$4 sm:$0xff]  }
 0x20d   :  { %3458 = vmatpush2.bf16.msra.mxu1 %v4969_v55  ;;  %v5056_v55 = vld [vmem:[%s6611_s4 + $0x9a8] ss:$16 sps:$4 sm:$0xff]  }
 0x20e   :  { %3501 = vmatpush2.bf16.msra.mxu0 %v4972_v37  ;;  %3459 = vmatprep.subr.bf16.mxu1 %v4977_v61  ;;  %v5061_v37 = vld [vmem:[%s6611_s4 + $0x78c] ss:$16 sps:$4 sm:$0xff]  }
 0x20f   :  { %3502 = vmatprep.subr.bf16.mxu0 %v4980_v62  ;;  %v5064_v61 = vld [vmem:[%s6611_s4 + $0x98c] ss:$16 sps:$4 sm:$0xff]   ;;  %v5059_v62 = vld [vmem:[%s6611_s4 + $0x788] ss:$16 sps:$4 sm:$0xff]  }
 0x211   :  { %3460 = vmatpush2.bf16.msra.mxu1 %v4975_v1  ;;  %v5062_v1 = vld [vmem:[%s6611_s4 + $0x988] ss:$16 sps:$4 sm:$0xff]  }
 0x212   :  { %3503 = vmatpush2.bf16.msra.mxu0 %v4978_v57  ;;  %3461 = vmatprep.subr.bf16.mxu1 %v4983_v35  ;;  %v5067_v57 = vld [vmem:[%s6611_s4 + $0x76c] ss:$16 sps:$4 sm:$0xff]  }
 0x213   :  { %3504 = vmatprep.subr.bf16.mxu0 %v4986_v3  ;;  %v5070_v35 = vld [vmem:[%s6611_s4 + $0x96c] ss:$16 sps:$4 sm:$0xff]   ;;  %v5065_v3 = vld [vmem:[%s6611_s4 + $0x768] ss:$16 sps:$4 sm:$0xff]  }
 0x215   :  { %3462 = vmatpush2.bf16.msra.mxu1 %v4981_v4  ;;  %v5068_v4 = vld [vmem:[%s6611_s4 + $0x968] ss:$16 sps:$4 sm:$0xff]  }
 0x216   :  { %3505 = vmatpush2.bf16.msra.mxu0 %v4984_v5  ;;  %3463 = vmatprep.subr.bf16.mxu1 %v4989_v6  ;;  %v5073_v5 = vld [vmem:[%s6611_s4 + $0x74c] ss:$16 sps:$4 sm:$0xff]  }
 0x217   :  { %3506 = vmatprep.subr.bf16.mxu0 %v4992_v7  ;;  %v5076_v6 = vld [vmem:[%s6611_s4 + $0x94c] ss:$16 sps:$4 sm:$0xff]   ;;  %v5071_v7 = vld [vmem:[%s6611_s4 + $0x748] ss:$16 sps:$4 sm:$0xff]  }
 0x219   :  { %3464 = vmatpush2.bf16.msra.mxu1 %v4987_v50  ;;  %v5074_v50 = vld [vmem:[%s6611_s4 + $0x948] ss:$16 sps:$4 sm:$0xff]  }
 0x21a   :  { %3507 = vmatpush2.bf16.msra.mxu0 %v4990_v54  ;;  %3519 = vmatprep.subr.bf16.mxu1 %v4995_v8  ;;  %v5079_v54 = vld [vmem:[%s6611_s4 + $0x72c] ss:$16 sps:$4 sm:$0xff]  }
 0x21b   :  { %3562 = vmatprep.subr.bf16.mxu0 %v4998_v13  ;;  %v5082_v8 = vld [vmem:[%s6611_s4 + $0x92c] ss:$16 sps:$4 sm:$0xff]   ;;  %v5077_v13 = vld [vmem:[%s6611_s4 + $0x728] ss:$16 sps:$4 sm:$0xff]  }
 0x21c   :  { %3466 = vmatmul.mubr.bf16.vlgmr.msra.gmra.mxu1 %v5737_v44  ;;  %v5007_v44 = vld [vmem:[%s6611_s4 + $0x6ac] ss:$16 sps:$4 sm:$0xff]  }
 0x21d   :  { %3509 = vmatmul.mubr.bf16.vlgmr.msra.gmra.mxu0 %v5982_v15  ;;  %3520 = vmatpush1.bf16.msra.mxu1 %v4993_v9  ;;  %v5010_v15 = vld [vmem:[%s6611_s4 + $0x8ac] ss:$16 sps:$4 sm:$0xff]   ;;  %v5080_v9 = vld [vmem:[%s6611_s4 + $0x928] ss:$16 sps:$4 sm:$0xff]  }
 0x21e   :  { %3551 = vmatprep.mubr.bf16.mxu1 %v5876_v41  ;;  %3563 = vmatpush1.bf16.msra.mxu0 %v4996_v10  ;;  %v5005_v41 = vld [vmem:[%s6611_s4 + $0x6a8] ss:$16 sps:$4 sm:$0xff]   ;;  %v5085_v10 = vld [vmem:[%s6611_s4 + $0x70c] ss:$16 sps:$4 sm:$0xff]  }
 0x21f   :  { %3594 = vmatprep.mubr.bf16.mxu0 %v5996_v2  ;;  %3521 = vmatprep.subr.bf16.mxu1 %v5001_v11  ;;  %v5013_v2 = vld [vmem:[%s6611_s4 + $0x68c] ss:$16 sps:$4 sm:$0xff]  }
 0x220   :  { %3564 = vmatprep.subr.bf16.mxu0 %v5004_v12  ;;  %v5088_v11 = vld [vmem:[%s6611_s4 + $0x90c] ss:$16 sps:$4 sm:$0xff]   ;;  %v5083_v12 = vld [vmem:[%s6611_s4 + $0x708] ss:$16 sps:$4 sm:$0xff]  }
 0x221   :  { %3522 = vmatpush1.bf16.msra.mxu1 %v4999_v22  ;;  %v5086_v22 = vld [vmem:[%s6611_s4 + $0x908] ss:$16 sps:$4 sm:$0xff]  }
 0x222   :  { %3565 = vmatpush1.bf16.msra.mxu0 %v5002_v14  ;;  %3523 = vmatprep.subr.bf16.mxu1 %v5007_v44  ;;  %v5089_v14 = vld [vmem:[#allocation4 + $0x78] sm:$0xff]  }
 0x223   :  { %3566 = vmatprep.subr.bf16.mxu0 %v5010_v15  ;;  %v5090_v44 = vld [vmem:[#allocation4 + $0x38] sm:$0xff]   ;;  %v5091_v15 = vld [vmem:[#allocation4 + $0x70] sm:$0xff]  }
 0x225   :  { %3524 = vmatpush1.bf16.msra.mxu1 %v5005_v41  ;;  %v5092_v41 = vld [vmem:[#allocation4 + $0x30] sm:$0xff]  }
 0x226   :  { %3567 = vmatpush1.bf16.msra.mxu0 %v5008_v24  ;;  %3525 = vmatprep.subr.bf16.mxu1 %v5013_v2  ;;  %v5093_v24 = vld [vmem:[#allocation4 + $0x68] sm:$0xff]  }
 0x227   :  { %3568 = vmatprep.subr.bf16.mxu0 %v5016_v46  ;;  %v5094_v2 = vld [vmem:[#allocation4 + $0x28] sm:$0xff]   ;;  %v5095_v46 = vld [vmem:[#allocation4 + $0x60] sm:$0xff]  }
 0x229   :  { %3526 = vmatpush1.bf16.msra.mxu1 %v5011_v18  ;;  %v5096_v18 = vld [vmem:[#allocation4 + $0x20] sm:$0xff]  }
 0x22a   :  { %3569 = vmatpush1.bf16.msra.mxu0 %v5014_v19  ;;  %3527 = vmatprep.subr.bf16.mxu1 %v5019_v20  ;;  %v5105_v19 = vld [vmem:[#allocation4 + $0xf8] sm:$0xff]  }
 0x22b   :  { %3570 = vmatprep.subr.bf16.mxu0 %v5022_v0  ;;  %v5106_v20 = vld [vmem:[#allocation4 + $0xb8] sm:$0xff]   ;;  %v5107_v0 = vld [vmem:[#allocation4 + $0xf0] sm:$0xff]  }
 0x22d   :  { %3528 = vmatpush1.bf16.msra.mxu1 %v5017_v21  ;;  %v5097_v21 = vld [vmem:[#allocation4 + $0x58] sm:$0xff]  }
 0x22e   :  { %3571 = vmatpush1.bf16.msra.mxu0 %v5020_v34  ;;  %3529 = vmatprep.subr.bf16.mxu1 %v5025_v27  ;;  %v5109_v34 = vld [vmem:[#allocation4 + $0xe8] sm:$0xff]   ;;  %v5099_v27 = vld [vmem:[#allocation4 + $0x50] sm:$0xff]  }
 0x22f   :  { %3572 = vmatprep.subr.bf16.mxu0 %v5028_v32  ;;  %v5110_v32 = vld [vmem:[#allocation4 + $0xa8] sm:$0xff]  }
 0x231   :  { %3530 = vmatpush1.bf16.msra.mxu1 %v5023_v33  ;;  %v5100_v33 = vld [vmem:[#allocation4 + $0x10] sm:$0xff]  }
 0x232   :  { %3573 = vmatpush1.bf16.msra.mxu0 %v5026_v29  ;;  %3531 = vmatprep.subr.bf16.mxu1 %v5031_v23  ;;  %v5111_v29 = vld [vmem:[#allocation4 + $0xe0] sm:$0xff]   ;;  %v5101_v23 = vld [vmem:[#allocation4 + $0x48] sm:$0xff]  }
 0x233   :  { %3574 = vmatprep.subr.bf16.mxu0 %v5034_v49  ;;  %v5112_v49 = vld [vmem:[#allocation4 + $0xa0] sm:$0xff]  }
 0x235   :  { %3532 = vmatpush1.bf16.msra.mxu1 %v5029_v16  ;;  %v5102_v16 = vld [vmem:[#allocation4 + $0x8] sm:$0xff]  }
 0x236   :  { %3575 = vmatpush1.bf16.msra.mxu0 %v5032_v25  ;;  %3533 = vmatprep.subr.bf16.mxu1 %v5037_v40  ;;  %v5103_v25 = vld [vmem:[#allocation4 + $0x40] sm:$0xff]  }
 0x237   :  { %3576 = vmatprep.subr.bf16.mxu0 %v5040_v42  ;;  %v5104_v40 = vld [vmem:[#allocation4] sm:$0xff]   ;;  %v3209_v42 = vpop.f32.mrf.mxu1 }
 0x239   :  { %3534 = vmatpush1.bf16.msra.mxu1 %v5035_v60  ;;  %v3211_v60 = vpop.f32.mrf.mxu1 }
 0x23a   :  { %3577 = vmatpush1.bf16.msra.mxu0 %v5038_v45  ;;  %3535 = vmatprep.subr.bf16.mxu1 %v5043_v47  ;;  %v3252_v45 = vpop.f32.mrf.mxu0 }
 0x23b   :  { %3578 = vmatprep.subr.bf16.mxu0 %v5046_v31  ;;  %v3213_v47 = vpop.f32.mrf.mxu1 }
 0x23c   :  { %v3254_v31 = vpop.f32.mrf.mxu0 }
 0x23d   :  { %3536 = vmatpush2.bf16.msra.mxu1 %v5041_v48  ;;  %v3215_v48 = vpop.f32.mrf.mxu1 }
 0x23e   :  { %3579 = vmatpush2.bf16.msra.mxu0 %v5044_v51  ;;  %3537 = vmatprep.subr.bf16.mxu1 %v5049_v53  ;;  %v3256_v51 = vpop.f32.mrf.mxu0 }
 0x23f   :  { %3580 = vmatprep.subr.bf16.mxu0 %v5052_v56  ;;  %v6586_v56 = vld [vmem:[%s6612_s5] sm:$0xf] }
 0x241   :  { %3538 = vmatpush2.bf16.msra.mxu1 %v5047_v36  ;;  %v1562_v36 = vrot.slane %v6586_v56, %v5653_v28 }
 0x242   :  { %3581 = vmatpush2.bf16.msra.mxu0 %v5050_v58  ;;  %3539 = vmatprep.subr.bf16.mxu1 %v5055_v43  ;;  %v1558_v58 = vrot.slane %v6586_v56, %v5416_v17  ;;  %v3258_v43 = vpop.f32.mrf.mxu0  ;;  %v5113_v17 = vld [vmem:[#allocation4 + $0xd8] sm:$0xff]  }
 0x243   :  { %3582 = vmatprep.subr.bf16.mxu0 %v5058_v38 }
 0x245   :  { %3540 = vmatpush2.bf16.msra.mxu1 %v5053_v52 }
 0x246   :  { %3583 = vmatpush2.bf16.msra.mxu0 %v5056_v55  ;;  %3541 = vmatprep.subr.bf16.mxu1 %v5061_v37  ;;  %v3212_v55 = vadd.f32 %v3211_v60, %v1562_v36  ;;  %v3214_v37 = vadd.f32 %v3213_v47, %v1558_v58  ;;  %v1570_v47 = vrot.slane %v6586_v56, %v363_v30 }
 0x247   :  { %3584 = vmatprep.subr.bf16.mxu0 %v5064_v61  ;;  %v3210_v61 = vadd.f32 %v3209_v42, %v1558_v58 }
 0x249   :  { %3542 = vmatpush2.bf16.msra.mxu1 %v5059_v62 }
 0x24a   :  { %3585 = vmatpush2.bf16.msra.mxu0 %v5062_v1  ;;  %3543 = vmatprep.subr.bf16.mxu1 %v5067_v57  ;;  %v3216_v1 = vadd.f32 %v3215_v48, %v1562_v36  ;;  %v1566_v48 = vrot.slane %v6586_v56, %v359_v26 }
 0x24b   :  { %3586 = vmatprep.subr.bf16.mxu0 %v5070_v35  ;;  %v3255_v35 = vadd.f32 %v3254_v31, %v3212_v55 }
 0x24d   :  { %3544 = vmatpush2.bf16.msra.mxu1 %v5065_v3  ;;  %v3257_v3 = vadd.f32 %v3256_v51, %v3214_v37 }
 0x24e   :  { %3587 = vmatpush2.bf16.msra.mxu0 %v5068_v4  ;;  %3545 = vmatprep.subr.bf16.mxu1 %v5073_v5  ;;  %v3253_v4 = vadd.f32 %v3252_v45, %v3210_v61 }
 0x24f   :  { %3588 = vmatprep.subr.bf16.mxu0 %v5076_v6  ;;  %v3259_v6 = vadd.f32 %v3258_v43, %v3216_v1 }
 0x251   :  { %3546 = vmatpush2.bf16.msra.mxu1 %v5071_v7 }
 0x252   :  { %3589 = vmatpush2.bf16.msra.mxu0 %v5074_v50  ;;  %3547 = vmatprep.subr.bf16.mxu1 %v5079_v54 }
 0x253   :  { %3590 = vmatprep.subr.bf16.mxu0 %v5082_v8 }
 0x255   :  { %3548 = vmatpush2.bf16.msra.mxu1 %v5077_v13 }
 0x256   :  { %3591 = vmatpush2.bf16.msra.mxu0 %v5080_v9  ;;  %3549 = vmatprep.subr.bf16.mxu1 %v5085_v10  ;;  %v5114_v9 = vld [vmem:[#allocation4 + $0x98] sm:$0xff]  }
 0x257   :  { %3592 = vmatprep.subr.bf16.mxu0 %v5088_v11 }
 0x259   :  { %3550 = vmatpush2.bf16.msra.mxu1 %v5083_v12 }
 0x25a   :  { %3593 = vmatpush2.bf16.msra.mxu0 %v5086_v22  ;;  %4438 = vmatprep.subr.bf16.mxu1 %v5089_v14 }
 0x25b   :  { %4460 = vmatprep.subr.bf16.mxu0 %v5105_v19 }
 0x25c   :  { %3552 = vmatmul.mubr.bf16.vlgmr.msra.gmra.mxu1 %v5987_v39  ;;  %v5108_v39 = vld [vmem:[#allocation4 + $0xb0] sm:$0xff]   ;;  %v3295_v53 = vpop.f32.mrf.mxu1 }
 0x25d   :  { %3595 = vmatmul.mubr.bf16.vlgmr.msra.gmra.mxu0 %v6196_v59  ;;  %4439 = vmatpush3.bf16.msra.mxu1 %v5090_v44  ;;  %v5098_v59 = vld [vmem:[#allocation4 + $0x18] sm:$0xff]   ;;  %v3338_v52 = vpop.f32.mrf.mxu0  ;;  %v3296_v28 = vadd.f32 %v3295_v53, %v3253_v4 }
 0x25e   :  { %4440 = vmatprep.subr.bf16.mxu1 %v5091_v15  ;;  %4461 = vmatpush3.bf16.msra.mxu0 %v5106_v20  ;;  %v3297_v38 = vpop.f32.mrf.mxu1  ;;  %v5115_v15 = vld [vmem:[#allocation4 + $0xd0] sm:$0xff]  }
 0x25f   :  { %4462 = vmatprep.subr.bf16.mxu0 %v5107_v0  ;;  %v3340_v57 = vpop.f32.mrf.mxu0  ;;  %v3298_v7 = vadd.f32 %v3297_v38, %v3255_v35  ;;  %v3339_v22 = vadd.f32 %v3338_v52, %v3296_v28 }
 0x260   :  { %v3299_v62 = vpop.f32.mrf.mxu1 }
 0x261   :  { %4441 = vmatpush3.bf16.msra.mxu1 %v5092_v41  ;;  %v3300_v50 = vadd.f32 %v3299_v62, %v3257_v3  ;;  %v3342_v54 = vpop.f32.mrf.mxu0  ;;  %v3341_v11 = vadd.f32 %v3340_v57, %v3298_v7 }
 0x262   :  { %4442 = vmatprep.subr.bf16.mxu1 %v5093_v24  ;;  %4463 = vmatpush3.bf16.msra.mxu0 %v5108_v39  ;;  %v3301_v5 = vpop.f32.mrf.mxu1 }
 0x263   :  { %4464 = vmatprep.subr.bf16.mxu0 %v5109_v34  ;;  %v3302_v13 = vadd.f32 %v3301_v5, %v3259_v6  ;;  %v3343_v12 = vadd.f32 %v3342_v54, %v3300_v50  ;;  %v3344_v14 = vpop.f32.mrf.mxu0  ;;  %v5118_v34 = vld [vmem:[#allocation4 + $0x88] sm:$0xff]  }
 0x265   :  { %4443 = vmatpush3.bf16.msra.mxu1 %v5094_v2  ;;  %v3345_v41 = vadd.f32 %v3344_v14, %v3302_v13 }
 0x266   :  { %4444 = vmatprep.subr.bf16.mxu1 %v5095_v46  ;;  %4465 = vmatpush3.bf16.msra.mxu0 %v5110_v32  ;;  %v5116_v46 = vld [vmem:[#allocation4 + $0x90] sm:$0xff]  }
 0x267   :  { %4466 = vmatprep.subr.bf16.mxu0 %v5111_v29  ;;  %v5119_v29 = vld [vmem:[#allocation4 + $0xc0] sm:$0xff]  }
 0x269   :  { %4445 = vmatpush3.bf16.msra.mxu1 %v5096_v18 }
 0x26a   :  { %4446 = vmatprep.subr.bf16.mxu1 %v5097_v21  ;;  %4467 = vmatpush3.bf16.msra.mxu0 %v5112_v49  ;;  %v5117_v21 = vld [vmem:[#allocation4 + $0xc8] sm:$0xff]  }
 0x26b   :  { %4468 = vmatprep.subr.bf16.mxu0 %v5113_v17 }
 0x26d   :  { %4447 = vmatpush3.bf16.msra.mxu1 %v5098_v59 }
 0x26e   :  { %4448 = vmatprep.subr.bf16.mxu1 %v5099_v27  ;;  %4469 = vmatpush3.bf16.msra.mxu0 %v5114_v9 }
 0x26f   :  { %4470 = vmatprep.subr.bf16.mxu0 %v5115_v15 }
 0x271   :  { %4449 = vmatpush3.bf16.msra.mxu1 %v5100_v33 }
 0x272   :  { %4450 = vmatprep.subr.bf16.mxu1 %v5101_v23  ;;  %4471 = vmatpush3.bf16.msra.mxu0 %v5116_v46  ;;  %v5120_v23 = vld [vmem:[#allocation4 + $0x80] sm:$0xff]  }
 0x273   :  { %4472 = vmatprep.subr.bf16.mxu0 %v5117_v21 }
 0x275   :  { %4451 = vmatpush3.bf16.msra.mxu1 %v5102_v16 }
 0x276   :  { %4452 = vmatprep.subr.bf16.mxu1 %v5103_v25  ;;  %4473 = vmatpush3.bf16.msra.mxu0 %v5118_v34 }
 0x277   :  { %4474 = vmatprep.subr.bf16.mxu0 %v5119_v29 }
 0x279   :  { %4453 = vmatpush3.bf16.msra.mxu1 %v5104_v40 }
 0x27a   :  { %4475 = vmatpush3.bf16.msra.mxu0 %v5120_v23 }
 0x29c   :  { %v3381_v8 = vpop.f32.mrf.mxu1 }
 0x29d   :  { %v3382_v18 = vadd.f32 %v3381_v8, %v3339_v22  ;;  %v3424_v49 = vpop.f32.mrf.mxu0 }
 0x29e   :  { %v3383_v10 = vpop.f32.mrf.mxu1  ;;  %v3425_v58 = vadd.f32 %v3424_v49, %v1566_v48 }
 0x29f   :  { %v3384_v24 = vadd.f32 %v3383_v10, %v3341_v11  ;;  %v3605_v27 = vmax.f32 %v3382_v18, 0.0  ;;  %v3426_v16 = vpop.f32.mrf.mxu0 }
 0x2a0   :  { %v3385_v44 = vpop.f32.mrf.mxu1  ;;  %v3427_v53 = vadd.f32 %v3426_v16, %v1570_v47 }
 0x2a1   :  { %v3386_v2 = vadd.f32 %v3385_v44, %v3343_v12  ;;  %v3606_v39 = vmax.f32 %v3384_v24, 0.0  ;;  %v3428_v25 = vpop.f32.mrf.mxu0 }
 0x2a2   :  { %v3387_v19 = vpop.f32.mrf.mxu1  ;;  %v3429_v43 = vadd.f32 %v3428_v25, %v1566_v48 }
 0x2a3   :  { %v3388_v20 = vadd.f32 %v3387_v19, %v3345_v41  ;;  %v3609_v0 = vmax.f32 %v3386_v2, 0.0  ;;  %v3430_v40 = vpop.f32.mrf.mxu0  ;;  %v4403_v19 = vld [vmem:[%s6614_s7] ss:$0 sm:$0xff] }
 0x2a4   :  { %v3431_v37 = vadd.f32 %v3430_v40, %v1570_v47 }
 0x2a5   :  { %v3610_v59 = vmax.f32 %v3388_v20, 0.0  ;;  %v3613_v33 = vpack.c.bf16 %v3609_v0, %v3605_v27 }
 0x2a7   :  { %v3614_v32 = vpack.c.bf16 %v3610_v59, %v3606_v39 }
 0x2a9   :  { %3912 = vmatprep.mubr.bf16.mxu1 %v3614_v32 }
 0x2aa   :  { %3913 = vmatmul.mubr.bf16.vlgmr.msra.gmra.mxu1 %v3613_v33 }
 0x2dc   :  { %v3467_v42 = vpop.f32.mrf.mxu1 }
 0x2dd   :  { %v3510_v60 = vpop.f32.mrf.mxu0  ;;  %v3468_v52 = vadd.f32 %v3467_v42, %v3425_v58 }
 0x2de   :  { %v3469_v45 = vpop.f32.mrf.mxu1 }
 0x2df   :  { %v3512_v31 = vpop.f32.mrf.mxu0  ;;  %v3470_v38 = vadd.f32 %v3469_v45, %v3427_v53  ;;  %v3511_v3 = vadd.f32 %v3510_v60, %v3468_v52 }
 0x2e0   :  { %v3471_v51 = vpop.f32.mrf.mxu1 }
 0x2e1   :  { %v3514_v36 = vpop.f32.mrf.mxu0  ;;  %v3472_v61 = vadd.f32 %v3471_v51, %v3429_v43  ;;  %v3513_v57 = vadd.f32 %v3512_v31, %v3470_v38 }
 0x2e2   :  { %v3473_v55 = vpop.f32.mrf.mxu1 }
 0x2e3   :  { %v3516_v62 = vpop.f32.mrf.mxu0  ;;  %v3474_v35 = vadd.f32 %v3473_v55, %v3431_v37  ;;  %v3515_v63 = vadd.f32 %v3514_v36, %v3472_v61 }
 0x2e5   :  { %v3517_v7 = vadd.f32 %v3516_v62, %v3474_v35 }
 0x31c   :  { %v3553_v1 = vpop.f32.mrf.mxu1 }
 0x31d   :  { %v3596_v30 = vpop.f32.mrf.mxu0  ;;  %v3554_v56 = vadd.f32 %v3553_v1, %v3511_v3 }
 0x31e   :  { %v3555_v4 = vpop.f32.mrf.mxu1 }
 0x31f   :  { %v3556_v5 = vadd.f32 %v3555_v4, %v3513_v57  ;;  %v3598_v26 = vpop.f32.mrf.mxu0  ;;  %v3597_v9 = vadd.f32 %v3596_v30, %v3554_v56 }
 0x320   :  { %v3557_v6 = vpop.f32.mrf.mxu1 }
 0x321   :  { %v3558_v50 = vadd.f32 %v3557_v6, %v3515_v63  ;;  %v3600_v28 = vpop.f32.mrf.mxu0  ;;  %v3599_v8 = vadd.f32 %v3598_v26, %v3556_v5  ;;  %v3607_v44 = vmax.f32 %v3597_v9, 0.0 }
 0x322   :  { %v3559_v54 = vpop.f32.mrf.mxu1 }
 0x323   :  { %v3601_v17 = vadd.f32 %v3600_v28, %v3558_v50  ;;  %v3560_v13 = vadd.f32 %v3559_v54, %v3517_v7  ;;  %v3602_v10 = vpop.f32.mrf.mxu0  ;;  %v3608_v22 = vmax.f32 %v3599_v8, 0.0 }
 0x325   :  { %v3603_v11 = vadd.f32 %v3602_v10, %v3560_v13  ;;  %v3611_v12 = vmax.f32 %v3601_v17, 0.0 }
 0x327   :  { %v3612_v14 = vmax.f32 %v3603_v11, 0.0  ;;  %v3615_v41 = vpack.c.bf16 %v3611_v12, %v3607_v44 }
 0x329   :  { %v3616_v15 = vpack.c.bf16 %v3612_v14, %v3608_v22 }
 0x32b   :  { %3953 = vmatprep.mubr.bf16.mxu0 %v3616_v15 }
 0x32c   :  { %3954 = vmatmul.mubr.bf16.vlgmr.msra.gmra.mxu0 %v3615_v41 }
 0x36a   :  { %v4454_v24 = vpop.f32.mrf.mxu1 }
 0x36c   :  { %v4455_v2 = vpop.f32.mrf.mxu1 }
 0x36d   :  { %v4456_v18 = vadd.f32 %v4455_v2, %v4454_v24 }
 0x36e   :  { %v4457_v46 = vpop.f32.mrf.mxu1 }
 0x36f   :  { %v3915_v39 = vadd.f32 %v4456_v18, %v4403_v19 }
 0x370   :  { %v4458_v20 = vpop.f32.mrf.mxu1 }
 0x371   :  { %v4459_v59 = vadd.f32 %v4458_v20, %v4457_v46 }
 0x373   :  { %v3918_v29 = vadd.f32 %v4459_v59, %v4403_v19 }
 0x3ec   :  { %v4476_v0 = vpop.f32.mrf.mxu0 }
 0x3ee   :  { %v4477_v21 = vpop.f32.mrf.mxu0 }
 0x3ef   :  { %v4478_v34 = vadd.f32 %v4477_v21, %v4476_v0 }
 0x3f0   :  { %v4479_v27 = vpop.f32.mrf.mxu0 }
 0x3f1   :  { %v3956_v32 = vadd.f32 %v4478_v34, %v3915_v39 }
 0x3f2   :  { %v4480_v33 = vpop.f32.mrf.mxu0 }
 0x3f3   :  { %v4436_v23 = vmul.f32 -1.442695, %v3956_v32  ;;  %v4481_v49 = vadd.f32 %v4480_v33, %v4479_v27 }
 0x3f5   :  { %5205 = vpow2.f32 %v4436_v23  ;;  %v3959_v16 = vadd.f32 %v4481_v49, %v3918_v29 }
 0x3f7   :  { %v4437_v25 = vmul.f32 -1.442695, %v3959_v16 }
 0x3f9   :  { %5207 = vpow2.f32 %v4437_v25 }
 0x402   :  { %v5206_v40 = vpop.eup %5205 }
 0x403   :  { %v3968_v42 = vadd.f32 1.0, %v5206_v40 }
 0x405   :  { %5209 = vrcp.f32 %v3968_v42 }
 0x406   :  { %v5208_v60 = vpop.eup %5207 }
 0x407   :  { %v3969_v45 = vadd.f32 1.0, %v5208_v60 }
 0x409   :  { %5211 = vrcp.f32 %v3969_v45 }
 0x412   :  { %v5210_v47 = vpop.eup %5209 }
 0x413   :  { %3974 = vst [vmem:[%s6615_s8] sm:$0xff] %v5210_v47 }
 0x416   :  { %v5212_v31 = vpop.eup %5211 }
 0x417   :  { %3975 = vst [vmem:[%s6615_s8 + $0x8] sm:$0xff] %v5212_v31 }
 0x418   :  { %3980 = vsyncpa [#allocation3], 1 }
 0x419   :  { %3981 = vsyncpa [#allocation5], 1 }

</bundles_post_ra>
